<compile_context>
chip_gen: v7x
topology: tpu7x:2x2x1
jax: 0.10.0
libtpu: 0.0.40
codegen_flags: <defaults>
</compile_context>

<pallas_src>
import functools
import math

import jax
import jax.numpy as jnp
from jax.experimental import pallas as pl
from jax.experimental.pallas import tpu as pltpu

CLASS_NUMS = 10

# (in_ch, ch1, ch3reduce, ch3, ch5reduce, ch5, pool_proj) -- static architecture
INCEPTION_CFG = {
    "i3a": (192, 64, 96, 128, 16, 32, 32),
    "i3b": (256, 128, 128, 192, 32, 96, 64),
    "i4a": (480, 192, 96, 208, 16, 48, 64),
    "i4b": (512, 160, 112, 224, 24, 64, 64),
    "i4c": (512, 128, 128, 256, 24, 64, 64),
    "i4d": (512, 112, 144, 288, 32, 64, 64),
    "i4e": (528, 256, 160, 320, 32, 128, 128),
    "i5a": (832, 256, 160, 320, 32, 128, 128),
    "i5b": (832, 384, 192, 384, 48, 128, 128),
}

_LANE = 128
_TM_CAP = 512                     # max rows per output tile
_TN_CAP = 256                     # max output-channel lanes per tile
_TK_CAP = 512                     # max contraction depth per K grid step
_SMALL_M = 64                     # below this, use XLA dot instead of pallas_call
_VMEM_LIMIT = 48 * 1024 * 1024    # <= v7x's 64 MiB/core; ample on v5e/v6e (128 MiB)


def _round_up(x, m):
    return (x + m - 1) // m * m


def _tile_and_pad(dim, cap, max_waste=0.5):
    """Choose (tile, padded_dim): tile is a multiple of 128 <= cap and padded_dim a
    multiple of tile.  Prefers the fewest grid steps, then the least padding, while
    rejecting choices that pad the dim by more than `max_waste` (zero-FLOP rows are
    cheaper than extra ~0.35us grid steps, but not unboundedly so)."""
    dp = _round_up(dim, _LANE)
    if dp <= cap:
        return dp, dp                       # single full-size tile, minimal padding
    best = None
    for t in range(_LANE, cap + 1, _LANE):
        p = _round_up(dim, t)
        if (p - dim) / dim > max_waste:
            continue
        key = (p // t, p)
        if best is None or key < best[0]:
            best = (key, t, p)
    if best is None:                        # fallback: minimal padding, 128 tiles
        return _LANE, dp
    return best[1], best[2]


def _pick_tile(dim, cap):
    """Largest multiple of 128 <= cap that divides `dim` (itself a 128-multiple)."""
    t = min(cap, dim)
    while dim % t:
        t -= _LANE
    return t


# ----------------------------------------------------------------------------
# Pallas kernel: tiled (M,K)@(K,N) with f32 accumulator, fused bias (+ ReLU)
# ----------------------------------------------------------------------------
def _matmul_bias_act_kernel(x_ref, w_ref, b_ref, o_ref, acc_ref, *, relu):
    @pl.when(pl.program_id(2) == 0)
    def _init():
        acc_ref[...] = jnp.zeros_like(acc_ref)

    acc_ref[...] += jnp.dot(
        x_ref[...], w_ref[...], preferred_element_type=jnp.float32
    )

    @pl.when(pl.program_id(2) == pl.num_programs(2) - 1)
    def _finalize():
        y = acc_ref[...] + b_ref[...]          # bias add in f32
        if relu:
            y = jnp.maximum(y, 0.0)
        o_ref[...] = y.astype(o_ref.dtype)


def matmul_bias_act(x, w, b, n_out, relu=True, out_dtype=jnp.bfloat16):
    """x: (M, K); w: (Kp, Np) bf16 pre-padded; b: (1, Np) f32 pre-padded.

    Returns (M, n_out) with fused bias (+ ReLU).  Accumulation is f32 on the MXU;
    tiny-M problems are routed to a plain XLA dot.
    """
    M, K = x.shape
    Kp, Np = w.shape
    assert K <= Kp and n_out <= Np, (x.shape, w.shape, n_out)

    # Tiny matmuls (block-4/5 inceptions at 2x2 / 1x1 spatial, final FC): the
    # 128-row MXU padding plus pallas_call fixed cost exceed the useful work.
    if M < _SMALL_M:
        y = jnp.dot(x.astype(jnp.bfloat16), w[:K],
                    preferred_element_type=jnp.float32) + b
        if relu:
            y = jnp.maximum(y, 0.0)
        return y[:, :n_out].astype(out_dtype)

    tm, Mp = _tile_and_pad(M, _TM_CAP)
    tk = _pick_tile(Kp, _TK_CAP)
    tn = _pick_tile(Np, _TN_CAP)

    # v7x shards the "parallel" grid axes over its two TensorCores; make sure at
    # least two (i, j) blocks exist so the second core is not idle (no-op v5e/v6e).
    if (Mp // tm) * (Np // tn) < 2:
        if tm % 256 == 0:
            tm //= 2
        elif tn % 256 == 0:
            tn //= 2

    xb = x.astype(jnp.bfloat16)
    if (Mp, Kp) != (M, K):
        xb = jnp.pad(xb, ((0, Mp - M), (0, Kp - K)))

    kernel = functools.partial(_matmul_bias_act_kernel, relu=relu)
    out = pl.pallas_call(
        kernel,
        out_shape=jax.ShapeDtypeStruct((Mp, Np), out_dtype),
        grid_spec=pltpu.PrefetchScalarGridSpec(
            num_scalar_prefetch=0,
            grid=(Mp // tm, Np // tn, Kp // tk),
            in_specs=[
                pl.BlockSpec((tm, tk), lambda i, j, k: (i, k)),
                pl.BlockSpec((tk, tn), lambda i, j, k: (k, j)),
                pl.BlockSpec((1, tn), lambda i, j, k: (0, j)),
            ],
            out_specs=pl.BlockSpec((tm, tn), lambda i, j, k: (i, j)),
            scratch_shapes=[pltpu.VMEM((tm, tn), jnp.float32)],
        ),
        compiler_params=pltpu.CompilerParams(
            dimension_semantics=("parallel", "parallel", "arbitrary"),
            vmem_limit_bytes=_VMEM_LIMIT,
        ),
    )(xb, w, b)

    return out[:M, :n_out]


# ----------------------------------------------------------------------------
# Conv2d (+ ReLU): 1x1 convs are a plain reshape + matmul; k>1 uses im2col.
# ----------------------------------------------------------------------------
def conv2d_relu(x_nhwc, layer, cout, ksize, stride=1, padding=0, relu=True):
    """x_nhwc: (N,H,W,Cin) bf16; layer: {'w': (Kp,Np) bf16, 'b': (1,Np) f32} with
    weight rows in (kh, kw, cin) im2col order."""
    KH = KW = ksize
    N, H, W, Cin = x_nhwc.shape

    if ksize == 1 and stride == 1 and padding == 0:
        out = matmul_bias_act(x_nhwc.reshape(N * H * W, Cin),
                              layer["w"], layer["b"], cout, relu=relu)
        return out.reshape(N, H, W, cout)

    # TODO(synk): fuse patch extraction for k>1 convs into the Pallas kernel
    # (KHxKW tap axis on the K grid) to avoid the im2col HBM round trip.
    xp = jnp.pad(
        x_nhwc, ((0, 0), (padding, padding), (padding, padding), (0, 0))
    )
    _, Hp, Wp, _ = xp.shape
    OH = (Hp - KH) // stride + 1
    OW = (Wp - KW) // stride + 1
    cols = []
    for i in range(KH):
        for j in range(KW):
            cols.append(
                xp[:, i: i + (OH - 1) * stride + 1: stride,
                      j: j + (OW - 1) * stride + 1: stride, :]
            )
    patches = jnp.concatenate(cols, axis=-1).reshape(N * OH * OW, KH * KW * Cin)
    out = matmul_bias_act(patches, layer["w"], layer["b"], cout, relu=relu)
    return out.reshape(N, OH, OW, cout)


# ----------------------------------------------------------------------------
# MaxPool2d (PyTorch ceil_mode semantics) -- cheap reduction, JAX glue
# ----------------------------------------------------------------------------
def maxpool2d(x_nhwc, kernel=3, stride=2, padding=0, ceil_mode=False):
    N, H, W, C = x_nhwc.shape

    def out_size(s):
        if ceil_mode:
            o = math.ceil((s + 2 * padding - kernel) / stride) + 1
            # PyTorch rule: last window must start inside input (incl. left pad)
            if (o - 1) * stride >= s + padding:
                o -= 1
        else:
            o = (s + 2 * padding - kernel) // stride + 1
        return o

    OH, OW = out_size(H), out_size(W)
    pad_h_r = max((OH - 1) * stride + kernel - H - padding, 0)
    pad_w_r = max((OW - 1) * stride + kernel - W - padding, 0)
    neg_inf = jnp.array(-jnp.inf, dtype=x_nhwc.dtype)
    xp = jnp.pad(
        x_nhwc,
        ((0, 0), (padding, pad_h_r), (padding, pad_w_r), (0, 0)),
        constant_values=neg_inf,
    )
    return jax.lax.reduce_window(
        xp, neg_inf, jax.lax.max,
        (1, kernel, kernel, 1), (1, stride, stride, 1), "VALID",
    )


# ----------------------------------------------------------------------------
# Parameter construction: deterministic, fan-in scaled, pre-transposed and
# pre-padded to the tile-friendly (Kp, Np) layout the Pallas matmul expects.
# ----------------------------------------------------------------------------
def _prep_linear(w, b):
    """w: (K, N) f32, b: (N,) f32 -> bf16 (Kp, Np) weight + f32 (1, Np) bias row."""
    K, N = w.shape
    _, Kp = _tile_and_pad(K, _TK_CAP)
    _, Np = _tile_and_pad(N, _TN_CAP)
    wp = jnp.zeros((Kp, Np), jnp.bfloat16).at[:K, :N].set(w.astype(jnp.bfloat16))
    bp = jnp.zeros((1, Np), jnp.float32).at[0, :N].set(b.astype(jnp.float32))
    return {"w": wp, "b": bp}


def build_params(seed=0):
    key = jax.random.PRNGKey(seed)
    state = {"key": key}

    def nk():
        state["key"], sub = jax.random.split(state["key"])
        return sub

    def make_conv(cin, cout, k):
        # Stored directly in matmul layout (KH*KW*Cin, Cout), row order (kh, kw, cin),
        # matching the im2col patch layout -> no per-forward relayout.
        fan_in = float(cin * k * k)
        w = jax.random.normal(nk(), (k * k * cin, cout), jnp.float32) / jnp.sqrt(fan_in)
        return _prep_linear(w, jnp.zeros((cout,), jnp.float32))

    def make_fused_reduce(cin, widths):
        # branch1 1x1 | branch2-reduce 1x1 | branch3-reduce 1x1 fused (same input).
        # Each segment is padded to a multiple of 128 output channels with ZERO
        # weight columns / zero bias so (a) ReLU(0+0)=0 keeps pad channels exactly
        # zero and (b) the downstream branch slices start on lane boundaries.
        cols, bias = [], []
        for wdt in widths:
            seg = _round_up(wdt, _LANE)
            wr = jax.random.normal(nk(), (cin, wdt), jnp.float32) / jnp.sqrt(float(cin))
            if seg > wdt:
                wr = jnp.concatenate([wr, jnp.zeros((cin, seg - wdt), jnp.float32)], 1)
            cols.append(wr)
            bias.append(jnp.zeros((seg,), jnp.float32))
        return _prep_linear(jnp.concatenate(cols, axis=1), jnp.concatenate(bias))

    def make_inception(cfg):
        cin, ch1, ch3r, ch3, ch5r, ch5, pp = cfg
        return {
            "r1x1": make_fused_reduce(cin, (ch1, ch3r, ch5r)),
            "b2b": make_conv(ch3r, ch3, 3),
            "b3b": make_conv(ch5r, ch5, 5),
            "b4": make_conv(cin, pp, 1),
        }

    params = {
        "c1": make_conv(3, 64, 7),
        "c2a": make_conv(64, 64, 1),
        "c2b": make_conv(64, 192, 3),
        "fc": _prep_linear(
            jax.random.normal(nk(), (1024, CLASS_NUMS), jnp.float32) / jnp.sqrt(1024.0),
            jnp.zeros((CLASS_NUMS,), jnp.float32)),
    }
    for name, cfg in INCEPTION_CFG.items():
        params[name] = make_inception(cfg)
    return params


# ----------------------------------------------------------------------------
# Forward pass
# ----------------------------------------------------------------------------
def inception_fwd(cfg, p, x):
    _, ch1, ch3r, ch3, ch5r, ch5, pp = cfg
    s1 = _round_up(ch1, _LANE)
    s2 = _round_up(ch3r, _LANE)
    s3 = _round_up(ch5r, _LANE)
    # The three 1x1 convs reading x are fused into one lane-dense matmul; the
    # branch segments start at 128-aligned channel offsets.
    fused = conv2d_relu(x, p["r1x1"], s1 + s2 + s3, 1)
    b1 = fused[..., :ch1]
    b2 = conv2d_relu(fused[..., s1:s1 + ch3r], p["b2b"], ch3, 3, padding=1)
    b3 = conv2d_relu(fused[..., s1 + s2:s1 + s2 + ch5r], p["b3b"], ch5, 5, padding=2)
    b4 = maxpool2d(x, kernel=3, stride=1, padding=1, ceil_mode=False)
    b4 = conv2d_relu(b4, p["b4"], pp, 1)
    # torch.cat(..., dim=1) == channel concat (last axis in NHWC), same order.
    return jnp.concatenate([b1, b2, b3, b4], axis=-1)


def googlenet_fwd(params, x_nchw):
    x = jnp.transpose(x_nchw, (0, 2, 3, 1)).astype(jnp.bfloat16)  # NCHW -> NHWC bf16
    # block1 (7x7 conv: K=147 pads only to 256 -> a single full-depth K step)
    x = conv2d_relu(x, params["c1"], 64, 7, stride=2, padding=3)
    x = maxpool2d(x, 3, 2, 0, ceil_mode=True)
    # block2
    x = conv2d_relu(x, params["c2a"], 64, 1)
    x = conv2d_relu(x, params["c2b"], 192, 3, padding=1)
    x = maxpool2d(x, 3, 2, 0, ceil_mode=True)
    # block3
    x = inception_fwd(INCEPTION_CFG["i3a"], params["i3a"], x)
    x = inception_fwd(INCEPTION_CFG["i3b"], params["i3b"], x)
    x = maxpool2d(x, 3, 2, 0, ceil_mode=True)
    # block4
    for name in ("i4a", "i4b", "i4c", "i4d", "i4e"):
        x = inception_fwd(INCEPTION_CFG[name], params[name], x)
    x = maxpool2d(x, 3, 2, 0, ceil_mode=True)
    # block5
    x = inception_fwd(INCEPTION_CFG["i5a"], params["i5a"], x)
    x = inception_fwd(INCEPTION_CFG["i5b"], params["i5b"], x)
    # AdaptiveAvgPool2d((1,1)) + flatten -> (N, 1024); Dropout(0.4) = identity (eval)
    feat = jnp.mean(x.astype(jnp.float32), axis=(1, 2))
    return matmul_bias_act(feat, params["fc"]["w"], params["fc"]["b"],
                           CLASS_NUMS, relu=False, out_dtype=jnp.float32)


# ----------------------------------------------------------------------------
if __name__ == "__main__":
    params = build_params(seed=0)
    x = jax.random.normal(jax.random.PRNGKey(0), (2, 3, 32, 32), jnp.float32)

    fwd = jax.jit(googlenet_fwd)
    out = jax.block_until_ready(fwd(params, x))

    assert out.shape == (2, CLASS_NUMS), out.shape
    assert bool(jnp.all(jnp.isfinite(out))), "non-finite output"
    print("KERNEL_OK")
</pallas_src>

<mosaic_0001>
module attributes {stable_mosaic.version = 11 : i64} {
  func.func @_matmul_bias_act_kernel(%arg0: i32, %arg1: i32, %arg2: i32, %arg3: memref<256x256xbf16, #tpu.memory_space<vmem>>, %arg4: memref<256x128xbf16, #tpu.memory_space<vmem>>, %arg5: memref<1x128xf32, #tpu.memory_space<vmem>>, %arg6: memref<256x128xbf16, #tpu.memory_space<vmem>>, %arg7: memref<256x128xf32, #tpu.memory_space<vmem>>) attributes {dimension_semantics = [#tpu.dimension_semantics<parallel>, #tpu.dimension_semantics<parallel>, #tpu.dimension_semantics<arbitrary>], iteration_bounds = array<i64: 2, 1, 1>, scalar_prefetch = 0 : i64, scratch_operands = 1 : i64, tpu.core_type = #tpu.core_type<tc>, window_params = [{transform_indices = @transform_0, window_bounds = array<i64: 256, 256>}, {transform_indices = @transform_1, window_bounds = array<i64: 256, 128>}, {transform_indices = @transform_2, window_bounds = array<i64: 1, 128>}, {transform_indices = @transform_3, window_bounds = array<i64: 256, 128>}]} {
    %c0_i32 = arith.constant 0 : i32
    %0 = arith.cmpi eq, %arg2, %c0_i32 : i32
    %1 = arith.extui %0 : i1 to i32
    %c0_i32_0 = arith.constant 0 : i32
    %2 = arith.cmpi ne, %1, %c0_i32_0 : i32
    scf.if %2 {
      %cst_10 = arith.constant 0.000000e+00 : f32
      %12 = vector.broadcast %cst_10 : f32 to vector<256x128xf32>
      %c0_11 = arith.constant 0 : index
      %c0_12 = arith.constant 0 : index
      %13 = vector.load %arg7[%c0_11, %c0_12] : memref<256x128xf32, #tpu.memory_space<vmem>>, vector<256x128xf32>
      tpu.vector_store %arg7[%c0_11, %c0_12], %12 {strides = array<i32>} : memref<256x128xf32, #tpu.memory_space<vmem>>, vector<256x128xf32>,
    } else {
    }
    %c0 = arith.constant 0 : index
    %c0_1 = arith.constant 0 : index
    %3 = vector.load %arg7[%c0, %c0_1] : memref<256x128xf32, #tpu.memory_space<vmem>>, vector<256x128xf32>
    %c0_2 = arith.constant 0 : index
    %c0_3 = arith.constant 0 : index
    %4 = vector.load %arg3[%c0_2, %c0_3] : memref<256x256xbf16, #tpu.memory_space<vmem>>, vector<256x256xbf16>
    %c0_4 = arith.constant 0 : index
    %c0_5 = arith.constant 0 : index
    %5 = vector.load %arg4[%c0_4, %c0_5] : memref<256x128xbf16, #tpu.memory_space<vmem>>, vector<256x128xbf16>
    %cst = arith.constant dense<0.000000e+00> : vector<256x128xf32>
    %6 = tpu.matmul %4, %5, %cst {dimension_numbers = #tpu.dot_dimension_numbers<[1], [0], [0], [1], [0, 0, 1, 1], [], []>} : vector<256x256xbf16>, vector<256x128xbf16>, vector<256x128xf32> -> vector<256x128xf32>
    %7 = arith.addf %3, %6 : vector<256x128xf32>
    %c0_6 = arith.constant 0 : index
    %c0_7 = arith.constant 0 : index
    %8 = vector.load %arg7[%c0_6, %c0_7] : memref<256x128xf32, #tpu.memory_space<vmem>>, vector<256x128xf32>
    tpu.vector_store %arg7[%c0_6, %c0_7], %7 {strides = array<i32>} : memref<256x128xf32, #tpu.memory_space<vmem>>, vector<256x128xf32>,
    %c0_i32_8 = arith.constant 0 : i32
    %9 = arith.cmpi eq, %arg2, %c0_i32_8 : i32
    %10 = arith.extui %9 : i1 to i32
    %c0_i32_9 = arith.constant 0 : i32
    %11 = arith.cmpi ne, %10, %c0_i32_9 : i32
    scf.if %11 {
      %c0_10 = arith.constant 0 : index
      %c0_11 = arith.constant 0 : index
      %12 = vector.load %arg7[%c0_10, %c0_11] : memref<256x128xf32, #tpu.memory_space<vmem>>, vector<256x128xf32>
      %c0_12 = arith.constant 0 : index
      %c0_13 = arith.constant 0 : index
      %13 = vector.load %arg5[%c0_12, %c0_13] : memref<1x128xf32, #tpu.memory_space<vmem>>, vector<1x128xf32>
      %14 = vector.broadcast %13 : vector<1x128xf32> to vector<256x128xf32>
      %15 = arith.addf %12, %14 : vector<256x128xf32>
      %cst_14 = arith.constant 0.000000e+00 : f32
      %16 = vector.broadcast %cst_14 : f32 to vector<256x128xf32>
      %17 = arith.maximumf %15, %16 : vector<256x128xf32>
      %18 = arith.truncf %17 : vector<256x128xf32> to vector<256x128xbf16>
      %c0_15 = arith.constant 0 : index
      %c0_16 = arith.constant 0 : index
      %19 = vector.load %arg6[%c0_15, %c0_16] : memref<256x128xbf16, #tpu.memory_space<vmem>>, vector<256x128xbf16>
      tpu.vector_store %arg6[%c0_15, %c0_16], %18 {strides = array<i32>} : memref<256x128xbf16, #tpu.memory_space<vmem>>, vector<256x128xbf16>,
    } else {
    }
    return
  }
  func.func @transform_0(%arg0: i32, %arg1: i32, %arg2: i32) -> (i32, i32) {
    %c0_i32 = arith.constant 0 : i32
    return %arg0, %arg2 : i32, i32
  }
  func.func @transform_1(%arg0: i32, %arg1: i32, %arg2: i32) -> (i32, i32) {
    %c0_i32 = arith.constant 0 : i32
    return %arg2, %arg1 : i32, i32
  }
  func.func @transform_2(%arg0: i32, %arg1: i32, %arg2: i32) -> (i32, i32) {
    %c0_i32 = arith.constant 0 : i32
    %c0_i32_0 = arith.constant 0 : i32
    return %c0_i32, %arg1 : i32, i32
  }
  func.func @transform_3(%arg0: i32, %arg1: i32, %arg2: i32) -> (i32, i32) {
    %c0_i32 = arith.constant 0 : i32
    return %arg0, %arg1 : i32, i32
  }
}

module attributes {stable_mosaic.version = 11 : i64} {
  func.func @_matmul_bias_act_kernel(%arg0: i32, %arg1: i32, %arg2: i32, %arg3: memref<128x128xbf16, #tpu.memory_space<vmem>>, %arg4: memref<128x128xbf16, #tpu.memory_space<vmem>>, %arg5: memref<1x128xf32, #tpu.memory_space<vmem>>, %arg6: memref<128x128xbf16, #tpu.memory_space<vmem>>, %arg7: memref<128x128xf32, #tpu.memory_space<vmem>>) attributes {dimension_semantics = [#tpu.dimension_semantics<parallel>, #tpu.dimension_semantics<parallel>, #tpu.dimension_semantics<arbitrary>], iteration_bounds = array<i64: 1, 1, 1>, scalar_prefetch = 0 : i64, scratch_operands = 1 : i64, tpu.core_type = #tpu.core_type<tc>, window_params = [{transform_indices = @transform_0, window_bounds = array<i64: 128, 128>}, {transform_indices = @transform_1, window_bounds = array<i64: 128, 128>}, {transform_indices = @transform_2, window_bounds = array<i64: 1, 128>}, {transform_indices = @transform_3, window_bounds = array<i64: 128, 128>}]} {
    %c0_i32 = arith.constant 0 : i32
    %0 = arith.cmpi eq, %arg2, %c0_i32 : i32
    %1 = arith.extui %0 : i1 to i32
    %c0_i32_0 = arith.constant 0 : i32
    %2 = arith.cmpi ne, %1, %c0_i32_0 : i32
    scf.if %2 {
      %cst_10 = arith.constant 0.000000e+00 : f32
      %12 = vector.broadcast %cst_10 : f32 to vector<128x128xf32>
      %c0_11 = arith.constant 0 : index
      %c0_12 = arith.constant 0 : index
      %13 = vector.load %arg7[%c0_11, %c0_12] : memref<128x128xf32, #tpu.memory_space<vmem>>, vector<128x128xf32>
      tpu.vector_store %arg7[%c0_11, %c0_12], %12 {strides = array<i32>} : memref<128x128xf32, #tpu.memory_space<vmem>>, vector<128x128xf32>,
    } else {
    }
    %c0 = arith.constant 0 : index
    %c0_1 = arith.constant 0 : index
    %3 = vector.load %arg7[%c0, %c0_1] : memref<128x128xf32, #tpu.memory_space<vmem>>, vector<128x128xf32>
    %c0_2 = arith.constant 0 : index
    %c0_3 = arith.constant 0 : index
    %4 = vector.load %arg3[%c0_2, %c0_3] : memref<128x128xbf16, #tpu.memory_space<vmem>>, vector<128x128xbf16>
    %c0_4 = arith.constant 0 : index
    %c0_5 = arith.constant 0 : index
    %5 = vector.load %arg4[%c0_4, %c0_5] : memref<128x128xbf16, #tpu.memory_space<vmem>>, vector<128x128xbf16>
    %cst = arith.constant dense<0.000000e+00> : vector<128x128xf32>
    %6 = tpu.matmul %4, %5, %cst {dimension_numbers = #tpu.dot_dimension_numbers<[1], [0], [0], [1], [0, 0, 1, 1], [], []>} : vector<128x128xbf16>, vector<128x128xbf16>, vector<128x128xf32> -> vector<128x128xf32>
    %7 = arith.addf %3, %6 : vector<128x128xf32>
    %c0_6 = arith.constant 0 : index
    %c0_7 = arith.constant 0 : index
    %8 = vector.load %arg7[%c0_6, %c0_7] : memref<128x128xf32, #tpu.memory_space<vmem>>, vector<128x128xf32>
    tpu.vector_store %arg7[%c0_6, %c0_7], %7 {strides = array<i32>} : memref<128x128xf32, #tpu.memory_space<vmem>>, vector<128x128xf32>,
    %c0_i32_8 = arith.constant 0 : i32
    %9 = arith.cmpi eq, %arg2, %c0_i32_8 : i32
    %10 = arith.extui %9 : i1 to i32
    %c0_i32_9 = arith.constant 0 : i32
    %11 = arith.cmpi ne, %10, %c0_i32_9 : i32
    scf.if %11 {
      %c0_10 = arith.constant 0 : index
      %c0_11 = arith.constant 0 : index
      %12 = vector.load %arg7[%c0_10, %c0_11] : memref<128x128xf32, #tpu.memory_space<vmem>>, vector<128x128xf32>
      %c0_12 = arith.constant 0 : index
      %c0_13 = arith.constant 0 : index
      %13 = vector.load %arg5[%c0_12, %c0_13] : memref<1x128xf32, #tpu.memory_space<vmem>>, vector<1x128xf32>
      %14 = vector.broadcast %13 : vector<1x128xf32> to vector<128x128xf32>
      %15 = arith.addf %12, %14 : vector<128x128xf32>
      %cst_14 = arith.constant 0.000000e+00 : f32
      %16 = vector.broadcast %cst_14 : f32 to vector<128x128xf32>
      %17 = arith.maximumf %15, %16 : vector<128x128xf32>
      %18 = arith.truncf %17 : vector<128x128xf32> to vector<128x128xbf16>
      %c0_15 = arith.constant 0 : index
      %c0_16 = arith.constant 0 : index
      %19 = vector.load %arg6[%c0_15, %c0_16] : memref<128x128xbf16, #tpu.memory_space<vmem>>, vector<128x128xbf16>
      tpu.vector_store %arg6[%c0_15, %c0_16], %18 {strides = array<i32>} : memref<128x128xbf16, #tpu.memory_space<vmem>>, vector<128x128xbf16>,
    } else {
    }
    return
  }
  func.func @transform_0(%arg0: i32, %arg1: i32, %arg2: i32) -> (i32, i32) {
    %c0_i32 = arith.constant 0 : i32
    return %arg0, %arg2 : i32, i32
  }
  func.func @transform_1(%arg0: i32, %arg1: i32, %arg2: i32) -> (i32, i32) {
    %c0_i32 = arith.constant 0 : i32
    return %arg2, %arg1 : i32, i32
  }
  func.func @transform_2(%arg0: i32, %arg1: i32, %arg2: i32) -> (i32, i32) {
    %c0_i32 = arith.constant 0 : i32
    %c0_i32_0 = arith.constant 0 : i32
    return %c0_i32, %arg1 : i32, i32
  }
  func.func @transform_3(%arg0: i32, %arg1: i32, %arg2: i32) -> (i32, i32) {
    %c0_i32 = arith.constant 0 : i32
    return %arg0, %arg1 : i32, i32
  }
}

module attributes {stable_mosaic.version = 11 : i64} {
  func.func @_matmul_bias_act_kernel(%arg0: i32, %arg1: i32, %arg2: i32, %arg3: memref<128x384xbf16, #tpu.memory_space<vmem>>, %arg4: memref<384x128xbf16, #tpu.memory_space<vmem>>, %arg5: memref<1x128xf32, #tpu.memory_space<vmem>>, %arg6: memref<128x128xbf16, #tpu.memory_space<vmem>>, %arg7: memref<128x128xf32, #tpu.memory_space<vmem>>) attributes {dimension_semantics = [#tpu.dimension_semantics<parallel>, #tpu.dimension_semantics<parallel>, #tpu.dimension_semantics<arbitrary>], iteration_bounds = array<i64: 1, 2, 2>, scalar_prefetch = 0 : i64, scratch_operands = 1 : i64, tpu.core_type = #tpu.core_type<tc>, window_params = [{transform_indices = @transform_0, window_bounds = array<i64: 128, 384>}, {transform_indices = @transform_1, window_bounds = array<i64: 384, 128>}, {transform_indices = @transform_2, window_bounds = array<i64: 1, 128>}, {transform_indices = @transform_3, window_bounds = array<i64: 128, 128>}]} {
    %c0_i32 = arith.constant 0 : i32
    %0 = arith.cmpi eq, %arg2, %c0_i32 : i32
    %1 = arith.extui %0 : i1 to i32
    %c0_i32_0 = arith.constant 0 : i32
    %2 = arith.cmpi ne, %1, %c0_i32_0 : i32
    scf.if %2 {
      %cst_9 = arith.constant 0.000000e+00 : f32
      %12 = vector.broadcast %cst_9 : f32 to vector<128x128xf32>
      %c0_10 = arith.constant 0 : index
      %c0_11 = arith.constant 0 : index
      %13 = vector.load %arg7[%c0_10, %c0_11] : memref<128x128xf32, #tpu.memory_space<vmem>>, vector<128x128xf32>
      tpu.vector_store %arg7[%c0_10, %c0_11], %12 {strides = array<i32>} : memref<128x128xf32, #tpu.memory_space<vmem>>, vector<128x128xf32>,
    } else {
    }
    %c0 = arith.constant 0 : index
    %c0_1 = arith.constant 0 : index
    %3 = vector.load %arg7[%c0, %c0_1] : memref<128x128xf32, #tpu.memory_space<vmem>>, vector<128x128xf32>
    %c0_2 = arith.constant 0 : index
    %c0_3 = arith.constant 0 : index
    %4 = vector.load %arg3[%c0_2, %c0_3] : memref<128x384xbf16, #tpu.memory_space<vmem>>, vector<128x384xbf16>
    %c0_4 = arith.constant 0 : index
    %c0_5 = arith.constant 0 : index
    %5 = vector.load %arg4[%c0_4, %c0_5] : memref<384x128xbf16, #tpu.memory_space<vmem>>, vector<384x128xbf16>
    %cst = arith.constant dense<0.000000e+00> : vector<128x128xf32>
    %6 = tpu.matmul %4, %5, %cst {dimension_numbers = #tpu.dot_dimension_numbers<[1], [0], [0], [1], [0, 0, 1, 1], [], []>} : vector<128x384xbf16>, vector<384x128xbf16>, vector<128x128xf32> -> vector<128x128xf32>
    %7 = arith.addf %3, %6 : vector<128x128xf32>
    %c0_6 = arith.constant 0 : index
    %c0_7 = arith.constant 0 : index
    %8 = vector.load %arg7[%c0_6, %c0_7] : memref<128x128xf32, #tpu.memory_space<vmem>>, vector<128x128xf32>
    tpu.vector_store %arg7[%c0_6, %c0_7], %7 {strides = array<i32>} : memref<128x128xf32, #tpu.memory_space<vmem>>, vector<128x128xf32>,
    %c1_i32 = arith.constant 1 : i32
    %9 = arith.cmpi eq, %arg2, %c1_i32 : i32
    %10 = arith.extui %9 : i1 to i32
    %c0_i32_8 = arith.constant 0 : i32
    %11 = arith.cmpi ne, %10, %c0_i32_8 : i32
    scf.if %11 {
      %c0_9 = arith.constant 0 : index
      %c0_10 = arith.constant 0 : index
      %12 = vector.load %arg7[%c0_9, %c0_10] : memref<128x128xf32, #tpu.memory_space<vmem>>, vector<128x128xf32>
      %c0_11 = arith.constant 0 : index
      %c0_12 = arith.constant 0 : index
      %13 = vector.load %arg5[%c0_11, %c0_12] : memref<1x128xf32, #tpu.memory_space<vmem>>, vector<1x128xf32>
      %14 = vector.broadcast %13 : vector<1x128xf32> to vector<128x128xf32>
      %15 = arith.addf %12, %14 : vector<128x128xf32>
      %cst_13 = arith.constant 0.000000e+00 : f32
      %16 = vector.broadcast %cst_13 : f32 to vector<128x128xf32>
      %17 = arith.maximumf %15, %16 : vector<128x128xf32>
      %18 = arith.truncf %17 : vector<128x128xf32> to vector<128x128xbf16>
      %c0_14 = arith.constant 0 : index
      %c0_15 = arith.constant 0 : index
      %19 = vector.load %arg6[%c0_14, %c0_15] : memref<128x128xbf16, #tpu.memory_space<vmem>>, vector<128x128xbf16>
      tpu.vector_store %arg6[%c0_14, %c0_15], %18 {strides = array<i32>} : memref<128x128xbf16, #tpu.memory_space<vmem>>, vector<128x128xbf16>,
    } else {
    }
    return
  }
  func.func @transform_0(%arg0: i32, %arg1: i32, %arg2: i32) -> (i32, i32) {
    %c0_i32 = arith.constant 0 : i32
    return %arg0, %arg2 : i32, i32
  }
  func.func @transform_1(%arg0: i32, %arg1: i32, %arg2: i32) -> (i32, i32) {
    %c0_i32 = arith.constant 0 : i32
    return %arg2, %arg1 : i32, i32
  }
  func.func @transform_2(%arg0: i32, %arg1: i32, %arg2: i32) -> (i32, i32) {
    %c0_i32 = arith.constant 0 : i32
    %c0_i32_0 = arith.constant 0 : i32
    return %c0_i32, %arg1 : i32, i32
  }
  func.func @transform_3(%arg0: i32, %arg1: i32, %arg2: i32) -> (i32, i32) {
    %c0_i32 = arith.constant 0 : i32
    return %arg0, %arg1 : i32, i32
  }
}

</mosaic_0001>

<bundles_post_ra>
// kernel: googlenet_fwd.4
= control target key start
LH: loop header
LB: loop body
LE: loop exit
PB: predicated region body
PF: predicated region fallthrough
CT: control target
= control target key end

     0   :  { %s721_s1 = inlined_call_operand.vmem [shape: bf16[128,128], index: 1, kind: input, shape index: {}]   ;;  %s722_s0 = inlined_call_operand.vmem [shape: bf16[128,128], index: 0, kind: input, shape index: {}]   ;;  %s723_s2 = inlined_call_operand.vmem [shape: f32[1,128], index: 2, kind: input, shape index: {}]   ;;  %s724_s3 = inlined_call_operand.vmem [shape: bf16[128,128], index: 3, kind: output, shape index: {}]  }
   0x1   :  { %v610_v0 = vld [vmem:[%s721_s1] sm:$0xff]   ;;  %v611_v1 = vld [vmem:[%s721_s1 + $0x8] sm:$0xff]   ;;  %v612_v2 = vld [vmem:[%s721_s1 + $0x10] sm:$0xff]  }
   0x2   :  { %562 = vmatprep.subr.bf16.mxu0 %v610_v0  ;;  %594 = vmatprep.subr.bf16.mxu1 %v610_v0  ;;  %v613_v3 = vld [vmem:[%s721_s1 + $0x18] sm:$0xff]   ;;  %v618_v4 = vld [vmem:[%s722_s0] sm:$0xff]   ;;  %v615_v7 = vld [vmem:[%s721_s1 + $0x28] sm:$0xff]  }
   0x3   :  { %563 = vmatpush3.bf16.msra.mxu0 %v610_v0  ;;  %602 = vmatpush3.bf16.msra.mxu1 %v610_v0  ;;  %v619_v5 = vld [vmem:[%s722_s0 + $0x20] sm:$0xff]   ;;  %v616_v8 = vld [vmem:[%s721_s1 + $0x30] sm:$0xff]   ;;  %v617_v9 = vld [vmem:[%s721_s1 + $0x38] sm:$0xff]  }
   0x4   :  { %564 = vmatprep.subr.bf16.mxu0 %v611_v1  ;;  %595 = vmatprep.subr.bf16.mxu1 %v611_v1  ;;  %v614_v6 = vld [vmem:[%s721_s1 + $0x20] sm:$0xff]   ;;  %v620_v10 = vld [vmem:[%s722_s0 + $0x8] sm:$0xff]   ;;  %v622_v12 = vld [vmem:[%s722_s0 + $0x10] sm:$0xff]  }
   0x5   :  { %578 = vmatprep.mubr.bf16.mxu0 %v618_v4  ;;  %586 = vmatprep.mubr.bf16.mxu1 %v619_v5  ;;  %v621_v11 = vld [vmem:[%s722_s0 + $0x28] sm:$0xff]   ;;  %v623_v13 = vld [vmem:[%s722_s0 + $0x30] sm:$0xff]   ;;  %v624_v14 = vld [vmem:[%s722_s0 + $0x18] sm:$0xff]  }
   0x6   :  { %v625_v15 = vld [vmem:[%s722_s0 + $0x38] sm:$0xff]   ;;  %v466_v16 = vld [vmem:[%s723_s2] ss:$0 sm:$0xff] }
   0x7   :  { %565 = vmatpush3.bf16.msra.mxu0 %v611_v1  ;;  %603 = vmatpush3.bf16.msra.mxu1 %v611_v1 }
   0x8   :  { %566 = vmatprep.subr.bf16.mxu0 %v612_v2  ;;  %596 = vmatprep.subr.bf16.mxu1 %v612_v2 }
   0xb   :  { %567 = vmatpush3.bf16.msra.mxu0 %v612_v2  ;;  %604 = vmatpush3.bf16.msra.mxu1 %v612_v2 }
   0xc   :  { %568 = vmatprep.subr.bf16.mxu0 %v613_v3  ;;  %597 = vmatprep.subr.bf16.mxu1 %v613_v3 }
   0xf   :  { %569 = vmatpush3.bf16.msra.mxu0 %v613_v3  ;;  %605 = vmatpush3.bf16.msra.mxu1 %v613_v3 }
  0x10   :  { %570 = vmatprep.subr.bf16.mxu0 %v614_v6  ;;  %598 = vmatprep.subr.bf16.mxu1 %v614_v6 }
  0x13   :  { %571 = vmatpush3.bf16.msra.mxu0 %v614_v6  ;;  %606 = vmatpush3.bf16.msra.mxu1 %v614_v6 }
  0x14   :  { %572 = vmatprep.subr.bf16.mxu0 %v615_v7  ;;  %599 = vmatprep.subr.bf16.mxu1 %v615_v7 }
  0x17   :  { %573 = vmatpush3.bf16.msra.mxu0 %v615_v7  ;;  %607 = vmatpush3.bf16.msra.mxu1 %v615_v7 }
  0x18   :  { %574 = vmatprep.subr.bf16.mxu0 %v616_v8  ;;  %600 = vmatprep.subr.bf16.mxu1 %v616_v8 }
  0x1b   :  { %575 = vmatpush3.bf16.msra.mxu0 %v616_v8  ;;  %608 = vmatpush3.bf16.msra.mxu1 %v616_v8 }
  0x1c   :  { %576 = vmatprep.subr.bf16.mxu0 %v617_v9  ;;  %601 = vmatprep.subr.bf16.mxu1 %v617_v9 }
  0x1f   :  { %577 = vmatpush3.bf16.msra.mxu0 %v617_v9  ;;  %609 = vmatpush3.bf16.msra.mxu1 %v617_v9 }
  0x22   :  { %579 = vmatmul.mubr.bf16.vlgmr.msra.gmra.mrb[0].mxu0 %v620_v10  ;;  %587 = vmatmul.mubr.bf16.vlgmr.msra.gmra.mrb[0].mxu1 %v621_v11 }
  0x23   :  { %582 = vmatprep.mubr.bf16.mxu0 %v622_v12  ;;  %590 = vmatprep.mubr.bf16.mxu1 %v623_v13 }
  0x2a   :  { %583 = vmatmul.mubr.bf16.gmra.mrb[4].mxu0 %v624_v14  ;;  %591 = vmatmul.mubr.bf16.gmra.mrb[4].mxu1 %v625_v15 }
  0xf5   :  { %v580_v17 = vpop.f32.mrb[0].mxu0  ;;  %v588_v18 = vpop.f32.mrb[0].mxu1 }
  0xf6   :  { %v336_v19 = vadd.f32 %v580_v17, %v466_v16  ;;  %v344_v20 = vadd.f32 %v588_v18, %v466_v16  ;;  %v213_v21 = vpop.f32.mrb[1].mxu0  ;;  %v245_v22 = vpop.f32.mrb[1].mxu1 }
  0xf7   :  { %v334_v23 = vadd.f32 %v466_v16, %v213_v21  ;;  %v342_v24 = vadd.f32 %v466_v16, %v245_v22  ;;  %v581_v25 = vpop.f32.mrb[2].mxu0  ;;  %v589_v26 = vpop.f32.mrb[2].mxu1 }
  0xf8   :  { %v337_v27 = vadd.f32 %v581_v25, %v466_v16  ;;  %v345_v28 = vadd.f32 %v589_v26, %v466_v16  ;;  %v216_v29 = vpop.f32.mrb[3].mxu0  ;;  %v248_v30 = vpop.f32.mrb[3].mxu1  ;;  %v352_v33 = vmax.f32 %v336_v19, 0.0  ;;  %v360_v34 = vmax.f32 %v344_v20, 0.0 }
  0xf9   :  { %v335_v31 = vadd.f32 %v466_v16, %v216_v29  ;;  %v343_v32 = vadd.f32 %v466_v16, %v248_v30  ;;  %v350_v37 = vmax.f32 %v334_v23, 0.0  ;;  %v358_v38 = vmax.f32 %v342_v24, 0.0 }
  0xfa   :  { %v353_v35 = vmax.f32 %v337_v27, 0.0  ;;  %v361_v36 = vmax.f32 %v345_v28, 0.0 }
  0xfb   :  { %v351_v39 = vmax.f32 %v335_v31, 0.0  ;;  %v359_v40 = vmax.f32 %v343_v32, 0.0 }
  0xfc   :  { %v507_v41 = vpack.c.bf16 %v353_v35, %v352_v33  ;;  %v527_v42 = vpack.c.bf16 %v361_v36, %v360_v34 }
  0xfd   :  { %v502_v43 = vpack.c.bf16 %v351_v39, %v350_v37  ;;  %v522_v44 = vpack.c.bf16 %v359_v40, %v358_v38  ;;  %v584_v45 = vpop.f32.mrb[4].mxu0  ;;  %v592_v46 = vpop.f32.mrb[4].mxu1 }
  0xfe   :  { %539 = vst [vmem:[%s724_s3 + $0x8] sm:$0xff] %v507_v41   ;;  %543 = vst [vmem:[%s724_s3 + $0x28] sm:$0xff] %v527_v42   ;;  %v340_v47 = vadd.f32 %v584_v45, %v466_v16  ;;  %v348_v48 = vadd.f32 %v592_v46, %v466_v16  ;;  %v229_v49 = vpop.f32.mrb[5].mxu0  ;;  %v261_v50 = vpop.f32.mrb[5].mxu1 }
  0xff   :  { %503 = vst [vmem:[%s724_s3] sm:$0xff] %v502_v43   ;;  %542 = vst [vmem:[%s724_s3 + $0x20] sm:$0xff] %v522_v44   ;;  %v338_v51 = vadd.f32 %v466_v16, %v229_v49  ;;  %v346_v52 = vadd.f32 %v466_v16, %v261_v50  ;;  %v585_v53 = vpop.f32.mrb[6].mxu0  ;;  %v593_v54 = vpop.f32.mrb[6].mxu1 }
 0x100   :  { %v341_v55 = vadd.f32 %v585_v53, %v466_v16  ;;  %v349_v56 = vadd.f32 %v593_v54, %v466_v16  ;;  %v232_v57 = vpop.f32.mrb[7].mxu0  ;;  %v264_v58 = vpop.f32.mrb[7].mxu1  ;;  %v356_v61 = vmax.f32 %v340_v47, 0.0  ;;  %v364_v62 = vmax.f32 %v348_v48, 0.0 }
 0x101   :  { %v339_v59 = vadd.f32 %v466_v16, %v232_v57  ;;  %v347_v60 = vadd.f32 %v466_v16, %v264_v58  ;;  %v354_v1 = vmax.f32 %v338_v51, 0.0  ;;  %v362_v2 = vmax.f32 %v346_v52, 0.0 }
 0x102   :  { %v357_v63 = vmax.f32 %v341_v55, 0.0  ;;  %v365_v0 = vmax.f32 %v349_v56, 0.0 }
 0x103   :  { %v355_v3 = vmax.f32 %v339_v59, 0.0  ;;  %v363_v4 = vmax.f32 %v347_v60, 0.0 }
 0x104   :  { %v517_v5 = vpack.c.bf16 %v357_v63, %v356_v61  ;;  %v537_v6 = vpack.c.bf16 %v365_v0, %v364_v62 }
 0x105   :  { %v512_v7 = vpack.c.bf16 %v355_v3, %v354_v1  ;;  %v532_v8 = vpack.c.bf16 %v363_v4, %v362_v2 }
 0x106   :  { %541 = vst [vmem:[%s724_s3 + $0x18] sm:$0xff] %v517_v5   ;;  %545 = vst [vmem:[%s724_s3 + $0x38] sm:$0xff] %v537_v6  }
 0x107   :  { %540 = vst [vmem:[%s724_s3 + $0x10] sm:$0xff] %v512_v7   ;;  %544 = vst [vmem:[%s724_s3 + $0x30] sm:$0xff] %v532_v8  }

// kernel: googlenet_fwd.3
= control target key start
LH: loop header
LB: loop body
LE: loop exit
PB: predicated region body
PF: predicated region fallthrough
CT: control target
= control target key end

     0   :  { %s1744_s12 = smov 0   ;;  %s1746_s13 = smov 0   ;;  %s1918_s0 = inlined_call_operand.vmem [shape: bf16[512,256], index: 0, kind: input, shape index: {}]   ;;  %s1919_s1 = inlined_call_operand.vmem [shape: bf16[256,128], index: 1, kind: input, shape index: {}]   ;;  %s1920_s2 = inlined_call_operand.vmem [shape: f32[1,128], index: 2, kind: input, shape index: {}]   ;;  %s1921_s3 = inlined_call_operand.vmem [shape: bf16[512,128], index: 3, kind: output, shape index: {}]  }
   0x1   :  { %s1748_s14 = smov 0  }
   0x2 LB: > { %s32_s15 = sadd.s32 1, %s1718_s13  ;;  %p1267_p0 = scmp.ge.s32.totalorder %s1722_s14, 1  ;;  %s1722_s14 = sphi %s1748_s14, %s13_s14   ;;  %s1718_s13 = sphi %s1746_s13, %s1923_s13   ;;  %s1714_s12 = sphi %s1744_s12, %s1922_s12  }
   0x3   : > { %p34_p1 = scmp.ge.s32.totalorder %s32_s15, 2  ;;  %p191_p2 = scmp.lt.s32.totalorder %s1722_s14, 3 }
   0x5   : > { %s1925_s15 = smov (%p34_p1, %s32_s15), 0  ;;  %p192_p3 = pnand %p1267_p0, %p191_p2 }
   0x6   : > { %v1636_v0 = vld [vmem:[%s1919_s1 + $0x40] sm:$0xff] (!%p192_p3)   ;;  %s1268_s18 = sshll.u32 (!%p192_p3), %s1714_s12, 5  ;;  %v1638_v2 = vld [vmem:[%s1919_s1 + $0x48] sm:$0xff] (!%p192_p3)   ;;  %v1640_v4 = vld [vmem:[%s1919_s1 + $0x50] sm:$0xff] (!%p192_p3)  }
   0x7   : > { %195 = sbr.rel (%p192_p3) target bundleno = 320 (0x140), region = 32  ;;  %v1637_v1 = vld [vmem:[%s1919_s1] sm:$0xff] (!%p192_p3)   ;;  %1484 = vmatprep.subr.bf16.mxu0 (!%p192_p3), %v1636_v0  ;;  %1596 = vmatprep.subr.bf16.mxu1 (!%p192_p3), %v1636_v0  ;;  %v1639_v3 = vld [vmem:[%s1919_s1 + $0x8] sm:$0xff] (!%p192_p3)   ;;  %p236_p4 = scmp.lt.s32.totalorder (!%p192_p3), %s1268_s18, 63  ;;  %v1641_v5 = vld [vmem:[%s1919_s1 + $0x10] sm:$0xff] (!%p192_p3)  }
   0x8   : > { %1485 = vmatpush3.bf16.msra.mxu0 (!%p192_p3), %v1637_v1  ;;  %1604 = vmatpush3.bf16.msra.mxu1 (!%p192_p3), %v1637_v1  ;;  %v1642_v6 = vld [vmem:[%s1919_s1 + $0x58] sm:$0xff] (!%p192_p3)   ;;  %v1644_v8 = vld [vmem:[%s1919_s1 + $0x60] sm:$0xff] (!%p192_p3)   ;;  %v1646_v10 = vld [vmem:[%s1919_s1 + $0x68] sm:$0xff] (!%p192_p3)  }
   0x9   : > { %1486 = vmatprep.subr.bf16.mxu0 (!%p192_p3), %v1638_v2  ;;  %1597 = vmatprep.subr.bf16.mxu1 (!%p192_p3), %v1638_v2  ;;  %v1643_v7 = vld [vmem:[%s1919_s1 + $0x18] sm:$0xff] (!%p192_p3)   ;;  %v1645_v9 = vld [vmem:[%s1919_s1 + $0x20] sm:$0xff] (!%p192_p3)   ;;  %v1647_v13 = vld [vmem:[%s1919_s1 + $0x28] sm:$0xff] (!%p192_p3)  }
   0xa   : > { %v1648_v14 = vld [vmem:[%s1919_s1 + $0x70] sm:$0xff] (!%p192_p3)   ;;  %v1650_v16 = vld [vmem:[%s1919_s1 + $0x78] sm:$0xff] (!%p192_p3)   ;;  %v1853_v51 = vld [vmem:[%s1920_s2] ss:$0 sm:$0xff] (!%p192_p3) }
   0xb   : > { %v1649_v15 = vld [vmem:[%s1919_s1 + $0x30] sm:$0xff] (!%p192_p3)   ;;  %v1651_v17 = vld [vmem:[%s1919_s1 + $0x38] sm:$0xff] (!%p192_p3)  }
   0xc   : > { %1487 = vmatpush3.bf16.msra.mxu0 (!%p192_p3), %v1639_v3  ;;  %1605 = vmatpush3.bf16.msra.mxu1 (!%p192_p3), %v1639_v3 }
   0xd   : > { %1488 = vmatprep.subr.bf16.mxu0 (!%p192_p3), %v1640_v4  ;;  %1598 = vmatprep.subr.bf16.mxu1 (!%p192_p3), %v1640_v4 }
   0xe   : > { %s1927_s18 = smov (!%p236_p4, %s1268_s18), 63 }
   0xf   : > { %s1356_s6 = sshll.u32 %s1927_s18, 3  ;;  %s1272_s5 = sshll.u32 %s1927_s18, 2 }
  0x10   : > { %1489 = vmatpush3.bf16.msra.mxu0 %v1641_v5  ;;  %1606 = vmatpush3.bf16.msra.mxu1 %v1641_v5  ;;  %s1795_s11 = scalar_lea.vmem %s1918_s0, %s1356_s6  ;;  %s1863_s8 = scalar_lea.vmem %s1921_s3, %s1272_s5 }
  0x11   : > { %1490 = vmatprep.subr.bf16.mxu0 %v1642_v6  ;;  %1599 = vmatprep.subr.bf16.mxu1 %v1642_v6  ;;  %v1654_v11 = vld [vmem:[%s1795_s11 + $0x4] ss:$8 sps:$4 sm:$0xff]   ;;  %v1652_v18 = vld [vmem:[%s1795_s11] ss:$8 sps:$4 sm:$0xff]   ;;  %v1658_v20 = vld [vmem:[%s1795_s11 + $0x14] ss:$8 sps:$4 sm:$0xff]  }
  0x12   : > { %v1657_v12 = vld [vmem:[%s1795_s11 + $0x84] ss:$8 sps:$4 sm:$0xff]   ;;  %688 = vmatprep.mubr.bf16.mxu0 %v1654_v11  ;;  %v1655_v19 = vld [vmem:[%s1795_s11 + $0x80] ss:$8 sps:$4 sm:$0xff]   ;;  %v1660_v21 = vld [vmem:[%s1795_s11 + $0x94] ss:$8 sps:$4 sm:$0xff]  }
  0x13   : > { %752 = vmatprep.mubr.bf16.mxu1 %v1657_v12  ;;  %v1662_v22 = vld [vmem:[%s1795_s11 + $0x10] ss:$8 sps:$4 sm:$0xff]   ;;  %v1664_v24 = vld [vmem:[%s1795_s11 + $0x24] ss:$8 sps:$4 sm:$0xff]   ;;  %v1668_v26 = vld [vmem:[%s1795_s11 + $0x20] ss:$8 sps:$4 sm:$0xff]  }
  0x14   : > { %1491 = vmatpush3.bf16.msra.mxu0 %v1643_v7  ;;  %1607 = vmatpush3.bf16.msra.mxu1 %v1643_v7  ;;  %v1663_v23 = vld [vmem:[%s1795_s11 + $0x90] ss:$8 sps:$4 sm:$0xff]   ;;  %v1666_v25 = vld [vmem:[%s1795_s11 + $0xa4] ss:$8 sps:$4 sm:$0xff]   ;;  %v1669_v27 = vld [vmem:[%s1795_s11 + $0xa0] ss:$8 sps:$4 sm:$0xff]  }
  0x15   : > { %1492 = vmatprep.subr.bf16.mxu0 %v1644_v8  ;;  %1600 = vmatprep.subr.bf16.mxu1 %v1644_v8  ;;  %v1670_v28 = vld [vmem:[%s1795_s11 + $0x34] ss:$8 sps:$4 sm:$0xff]   ;;  %v1674_v30 = vld [vmem:[%s1795_s11 + $0x30] ss:$8 sps:$4 sm:$0xff]   ;;  %v1676_v32 = vld [vmem:[%s1795_s11 + $0x44] ss:$8 sps:$4 sm:$0xff]  }
  0x16   : > { %v1672_v29 = vld [vmem:[%s1795_s11 + $0xb4] ss:$8 sps:$4 sm:$0xff]   ;;  %v1675_v31 = vld [vmem:[%s1795_s11 + $0xb0] ss:$8 sps:$4 sm:$0xff]   ;;  %v1678_v33 = vld [vmem:[%s1795_s11 + $0xc4] ss:$8 sps:$4 sm:$0xff]  }
  0x17   : > { %v1680_v34 = vld [vmem:[%s1795_s11 + $0x40] ss:$8 sps:$4 sm:$0xff]   ;;  %v1682_v36 = vld [vmem:[%s1795_s11 + $0x54] ss:$8 sps:$4 sm:$0xff]   ;;  %v1686_v38 = vld [vmem:[%s1795_s11 + $0x50] ss:$8 sps:$4 sm:$0xff]  }
  0x18   : > { %1493 = vmatpush3.bf16.msra.mxu0 %v1645_v9  ;;  %1608 = vmatpush3.bf16.msra.mxu1 %v1645_v9  ;;  %v1681_v35 = vld [vmem:[%s1795_s11 + $0xc0] ss:$8 sps:$4 sm:$0xff]   ;;  %v1684_v37 = vld [vmem:[%s1795_s11 + $0xd4] ss:$8 sps:$4 sm:$0xff]   ;;  %v1687_v39 = vld [vmem:[%s1795_s11 + $0xd0] ss:$8 sps:$4 sm:$0xff]  }
  0x19   : > { %1494 = vmatprep.subr.bf16.mxu0 %v1646_v10  ;;  %1601 = vmatprep.subr.bf16.mxu1 %v1646_v10  ;;  %v1688_v40 = vld [vmem:[%s1795_s11 + $0x64] ss:$8 sps:$4 sm:$0xff]   ;;  %v1692_v42 = vld [vmem:[%s1795_s11 + $0x60] ss:$8 sps:$4 sm:$0xff]   ;;  %v1694_v44 = vld [vmem:[%s1795_s11 + $0x74] ss:$8 sps:$4 sm:$0xff]  }
  0x1a   : > { %v1690_v41 = vld [vmem:[%s1795_s11 + $0xe4] ss:$8 sps:$4 sm:$0xff]   ;;  %v1693_v43 = vld [vmem:[%s1795_s11 + $0xe0] ss:$8 sps:$4 sm:$0xff]   ;;  %v1696_v45 = vld [vmem:[%s1795_s11 + $0xf4] ss:$8 sps:$4 sm:$0xff]  }
  0x1b   : > { %v1698_v46 = vld [vmem:[%s1795_s11 + $0x70] ss:$8 sps:$4 sm:$0xff]  }
  0x1c   : > { %1495 = vmatpush3.bf16.msra.mxu0 %v1647_v13  ;;  %1609 = vmatpush3.bf16.msra.mxu1 %v1647_v13  ;;  %v1699_v47 = vld [vmem:[%s1795_s11 + $0xf0] ss:$8 sps:$4 sm:$0xff]  }
  0x1d   : > { %1496 = vmatprep.subr.bf16.mxu0 %v1648_v14  ;;  %1602 = vmatprep.subr.bf16.mxu1 %v1648_v14 }
  0x20   : > { %1497 = vmatpush3.bf16.msra.mxu0 %v1649_v15  ;;  %1610 = vmatpush3.bf16.msra.mxu1 %v1649_v15 }
  0x21   : > { %1498 = vmatprep.subr.bf16.mxu0 %v1650_v16  ;;  %1603 = vmatprep.subr.bf16.mxu1 %v1650_v16 }
  0x24   : > { %1499 = vmatpush3.bf16.msra.mxu0 %v1651_v17  ;;  %1611 = vmatpush3.bf16.msra.mxu1 %v1651_v17 }
  0x27   : > { %689 = vmatmul.mubr.bf16.vlgmr.msra.gmra.mrb[0].mxu0 %v1652_v18  ;;  %753 = vmatmul.mubr.bf16.vlgmr.msra.gmra.mrb[0].mxu1 %v1655_v19 }
  0x28   : > { %696 = vmatprep.mubr.bf16.mxu0 %v1658_v20  ;;  %760 = vmatprep.mubr.bf16.mxu1 %v1660_v21 }
  0x2f   : > { %697 = vmatmul.mubr.bf16.gmra.mrb[4].mxu0 %v1662_v22  ;;  %761 = vmatmul.mubr.bf16.gmra.mrb[4].mxu1 %v1663_v23 }
  0x30   : > { %704 = vmatprep.mubr.bf16.mxu0 %v1664_v24  ;;  %768 = vmatprep.mubr.bf16.mxu1 %v1666_v25 }
  0x37   : > { %705 = vmatmul.mubr.bf16.gmra.mrb[8].mxu0 %v1668_v26  ;;  %769 = vmatmul.mubr.bf16.gmra.mrb[8].mxu1 %v1669_v27 }
  0x38   : > { %712 = vmatprep.mubr.bf16.mxu0 %v1670_v28  ;;  %776 = vmatprep.mubr.bf16.mxu1 %v1672_v29 }
  0x3f   : > { %713 = vmatmul.mubr.bf16.gmra.mrb[12].mxu0 %v1674_v30  ;;  %777 = vmatmul.mubr.bf16.gmra.mrb[12].mxu1 %v1675_v31 }
  0x40   : > { %720 = vmatprep.mubr.bf16.mxu0 %v1676_v32  ;;  %784 = vmatprep.mubr.bf16.mxu1 %v1678_v33 }
  0x47   : > { %721 = vmatmul.mubr.bf16.gmra.mrb[16].mxu0 %v1680_v34  ;;  %785 = vmatmul.mubr.bf16.gmra.mrb[16].mxu1 %v1681_v35 }
  0x48   : > { %728 = vmatprep.mubr.bf16.mxu0 %v1682_v36  ;;  %792 = vmatprep.mubr.bf16.mxu1 %v1684_v37 }
  0x4f   : > { %729 = vmatmul.mubr.bf16.gmra.mrb[20].mxu0 %v1686_v38  ;;  %793 = vmatmul.mubr.bf16.gmra.mrb[20].mxu1 %v1687_v39 }
  0x50   : > { %736 = vmatprep.mubr.bf16.mxu0 %v1688_v40  ;;  %800 = vmatprep.mubr.bf16.mxu1 %v1690_v41 }
  0x57   : > { %737 = vmatmul.mubr.bf16.gmra.mrb[24].mxu0 %v1692_v42  ;;  %801 = vmatmul.mubr.bf16.gmra.mrb[24].mxu1 %v1693_v43 }
  0x58   : > { %744 = vmatprep.mubr.bf16.mxu0 %v1694_v44  ;;  %808 = vmatprep.mubr.bf16.mxu1 %v1696_v45 }
  0x5f   : > { %745 = vmatmul.mubr.bf16.gmra.mrb[28].mxu0 %v1698_v46  ;;  %809 = vmatmul.mubr.bf16.gmra.mrb[28].mxu1 %v1699_v47 }
  0xfa   : > { %v1500_v48 = vpop.f32.mrb[0].mxu0  ;;  %v1548_v49 = vpop.f32.mrb[0].mxu1 }
  0xfb   : > { %v1501_v50 = vpop.f32.mrb[1].mxu0  ;;  %v1549_v52 = vpop.f32.mrb[1].mxu1 }
  0xfc   : > { %v1502_v53 = vadd.f32 %v1501_v50, %v1500_v48  ;;  %v1550_v54 = vadd.f32 %v1549_v52, %v1548_v49  ;;  %v1503_v55 = vpop.f32.mrb[2].mxu0  ;;  %v1551_v56 = vpop.f32.mrb[2].mxu1 }
  0xfd   : > { %v1504_v57 = vpop.f32.mrb[3].mxu0  ;;  %v1552_v58 = vpop.f32.mrb[3].mxu1 }
  0xfe   : > { %v923_v59 = vadd.f32 %v1502_v53, %v1853_v51  ;;  %v939_v60 = vadd.f32 %v1550_v54, %v1853_v51  ;;  %v1505_v61 = vadd.f32 %v1504_v57, %v1503_v55  ;;  %v1553_v62 = vadd.f32 %v1552_v58, %v1551_v56 }
 0x100   : > { %v924_v63 = vadd.f32 %v1505_v61, %v1853_v51  ;;  %v940_v0 = vadd.f32 %v1553_v62, %v1853_v51  ;;  %v955_v1 = vmax.f32 %v923_v59, 0.0  ;;  %v971_v2 = vmax.f32 %v939_v60, 0.0 }
 0x102   : > { %v956_v3 = vmax.f32 %v924_v63, 0.0  ;;  %v972_v4 = vmax.f32 %v940_v0, 0.0  ;;  %v1506_v5 = vpop.f32.mrb[4].mxu0  ;;  %v1554_v6 = vpop.f32.mrb[4].mxu1 }
 0x103   : > { %v1507_v7 = vpop.f32.mrb[5].mxu0  ;;  %v1555_v8 = vpop.f32.mrb[5].mxu1 }
 0x104   : > { %v1392_v9 = vpack.c.bf16 %v956_v3, %v955_v1  ;;  %v1432_v10 = vpack.c.bf16 %v972_v4, %v971_v2  ;;  %v1508_v11 = vadd.f32 %v1507_v7, %v1506_v5  ;;  %v1556_v12 = vadd.f32 %v1555_v8, %v1554_v6  ;;  %v1509_v13 = vpop.f32.mrb[6].mxu0  ;;  %v1557_v14 = vpop.f32.mrb[6].mxu1 }
 0x105   : > { %v1510_v15 = vpop.f32.mrb[7].mxu0  ;;  %v1558_v16 = vpop.f32.mrb[7].mxu1 }
 0x106   : > { %1393 = vst [vmem:[%s1863_s8] sm:$0xff] %v1392_v9   ;;  %1476 = vst [vmem:[%s1863_s8 + $0x40] sm:$0xff] %v1432_v10   ;;  %v925_v17 = vadd.f32 %v1508_v11, %v1853_v51  ;;  %v941_v18 = vadd.f32 %v1556_v12, %v1853_v51  ;;  %v1511_v19 = vadd.f32 %v1510_v15, %v1509_v13 }
 0x107   : > { %v1559_v20 = vadd.f32 %v1558_v16, %v1557_v14 }
 0x108   : > { %v926_v21 = vadd.f32 %v1511_v19, %v1853_v51  ;;  %v957_v23 = vmax.f32 %v925_v17, 0.0  ;;  %v973_v24 = vmax.f32 %v941_v18, 0.0 }
 0x109   : > { %v942_v22 = vadd.f32 %v1559_v20, %v1853_v51 }
 0x10a   : > { %v958_v25 = vmax.f32 %v926_v21, 0.0  ;;  %v1512_v27 = vpop.f32.mrb[8].mxu0  ;;  %v1560_v28 = vpop.f32.mrb[8].mxu1 }
 0x10b   : > { %v974_v26 = vmax.f32 %v942_v22, 0.0  ;;  %v1513_v29 = vpop.f32.mrb[9].mxu0  ;;  %v1561_v30 = vpop.f32.mrb[9].mxu1 }
 0x10c   : > { %v1397_v31 = vpack.c.bf16 %v958_v25, %v957_v23  ;;  %v1514_v33 = vadd.f32 %v1513_v29, %v1512_v27  ;;  %v1562_v34 = vadd.f32 %v1561_v30, %v1560_v28  ;;  %v1515_v35 = vpop.f32.mrb[10].mxu0  ;;  %v1563_v36 = vpop.f32.mrb[10].mxu1 }
 0x10d   : > { %v1437_v32 = vpack.c.bf16 %v974_v26, %v973_v24  ;;  %v1516_v37 = vpop.f32.mrb[11].mxu0  ;;  %v1564_v38 = vpop.f32.mrb[11].mxu1 }
 0x10e   : > { %1469 = vst [vmem:[%s1863_s8 + $0x8] sm:$0xff] %v1397_v31   ;;  %v927_v39 = vadd.f32 %v1514_v33, %v1853_v51  ;;  %v943_v40 = vadd.f32 %v1562_v34, %v1853_v51  ;;  %v1517_v41 = vadd.f32 %v1516_v37, %v1515_v35  ;;  %v1565_v42 = vadd.f32 %v1564_v38, %v1563_v36 }
 0x10f   : > { %1477 = vst [vmem:[%s1863_s8 + $0x48] sm:$0xff] %v1437_v32  }
 0x110   : > { %v928_v43 = vadd.f32 %v1517_v41, %v1853_v51  ;;  %v944_v44 = vadd.f32 %v1565_v42, %v1853_v51  ;;  %v959_v45 = vmax.f32 %v927_v39, 0.0  ;;  %v975_v46 = vmax.f32 %v943_v40, 0.0 }
 0x112   : > { %v960_v47 = vmax.f32 %v928_v43, 0.0  ;;  %v976_v48 = vmax.f32 %v944_v44, 0.0  ;;  %v1518_v49 = vpop.f32.mrb[12].mxu0  ;;  %v1566_v50 = vpop.f32.mrb[12].mxu1 }
 0x113   : > { %v1519_v52 = vpop.f32.mrb[13].mxu0  ;;  %v1567_v53 = vpop.f32.mrb[13].mxu1 }
 0x114   : > { %v1402_v54 = vpack.c.bf16 %v960_v47, %v959_v45  ;;  %v1442_v55 = vpack.c.bf16 %v976_v48, %v975_v46  ;;  %v1520_v56 = vadd.f32 %v1519_v52, %v1518_v49  ;;  %v1568_v57 = vadd.f32 %v1567_v53, %v1566_v50  ;;  %v1521_v58 = vpop.f32.mrb[14].mxu0  ;;  %v1569_v59 = vpop.f32.mrb[14].mxu1 }
 0x115   : > { %v1522_v60 = vpop.f32.mrb[15].mxu0  ;;  %v1570_v61 = vpop.f32.mrb[15].mxu1 }
 0x116   : > { %1470 = vst [vmem:[%s1863_s8 + $0x10] sm:$0xff] %v1402_v54   ;;  %1478 = vst [vmem:[%s1863_s8 + $0x50] sm:$0xff] %v1442_v55   ;;  %v929_v62 = vadd.f32 %v1520_v56, %v1853_v51  ;;  %v945_v63 = vadd.f32 %v1568_v57, %v1853_v51  ;;  %v1523_v0 = vadd.f32 %v1522_v60, %v1521_v58 }
 0x117   : > { %v1571_v1 = vadd.f32 %v1570_v61, %v1569_v59 }
 0x118   : > { %v930_v2 = vadd.f32 %v1523_v0, %v1853_v51  ;;  %v961_v4 = vmax.f32 %v929_v62, 0.0  ;;  %v977_v5 = vmax.f32 %v945_v63, 0.0 }
 0x119   : > { %v946_v3 = vadd.f32 %v1571_v1, %v1853_v51 }
 0x11a   : > { %v962_v6 = vmax.f32 %v930_v2, 0.0  ;;  %v1524_v8 = vpop.f32.mrb[16].mxu0  ;;  %v1572_v9 = vpop.f32.mrb[16].mxu1 }
 0x11b   : > { %v978_v7 = vmax.f32 %v946_v3, 0.0  ;;  %v1525_v10 = vpop.f32.mrb[17].mxu0  ;;  %v1573_v11 = vpop.f32.mrb[17].mxu1 }
 0x11c   : > { %v1407_v12 = vpack.c.bf16 %v962_v6, %v961_v4  ;;  %v1526_v14 = vadd.f32 %v1525_v10, %v1524_v8  ;;  %v1574_v15 = vadd.f32 %v1573_v11, %v1572_v9  ;;  %v1527_v16 = vpop.f32.mrb[18].mxu0  ;;  %v1575_v17 = vpop.f32.mrb[18].mxu1 }
 0x11d   : > { %v1447_v13 = vpack.c.bf16 %v978_v7, %v977_v5  ;;  %v1528_v18 = vpop.f32.mrb[19].mxu0  ;;  %v1576_v19 = vpop.f32.mrb[19].mxu1 }
 0x11e   : > { %1471 = vst [vmem:[%s1863_s8 + $0x18] sm:$0xff] %v1407_v12   ;;  %v931_v20 = vadd.f32 %v1526_v14, %v1853_v51  ;;  %v947_v21 = vadd.f32 %v1574_v15, %v1853_v51  ;;  %v1529_v22 = vadd.f32 %v1528_v18, %v1527_v16  ;;  %v1577_v23 = vadd.f32 %v1576_v19, %v1575_v17 }
 0x11f   : > { %1479 = vst [vmem:[%s1863_s8 + $0x58] sm:$0xff] %v1447_v13  }
 0x120   : > { %v932_v24 = vadd.f32 %v1529_v22, %v1853_v51  ;;  %v948_v25 = vadd.f32 %v1577_v23, %v1853_v51  ;;  %v963_v26 = vmax.f32 %v931_v20, 0.0  ;;  %v979_v27 = vmax.f32 %v947_v21, 0.0 }
 0x122   : > { %v964_v28 = vmax.f32 %v932_v24, 0.0  ;;  %v980_v29 = vmax.f32 %v948_v25, 0.0  ;;  %v1530_v30 = vpop.f32.mrb[20].mxu0  ;;  %v1578_v31 = vpop.f32.mrb[20].mxu1 }
 0x123   : > { %v1531_v32 = vpop.f32.mrb[21].mxu0  ;;  %v1579_v33 = vpop.f32.mrb[21].mxu1 }
 0x124   : > { %v1412_v34 = vpack.c.bf16 %v964_v28, %v963_v26  ;;  %v1452_v35 = vpack.c.bf16 %v980_v29, %v979_v27  ;;  %v1532_v36 = vadd.f32 %v1531_v32, %v1530_v30  ;;  %v1580_v37 = vadd.f32 %v1579_v33, %v1578_v31  ;;  %v1533_v38 = vpop.f32.mrb[22].mxu0  ;;  %v1581_v39 = vpop.f32.mrb[22].mxu1 }
 0x125   : > { %v1534_v40 = vpop.f32.mrb[23].mxu0  ;;  %v1582_v41 = vpop.f32.mrb[23].mxu1 }
 0x126   : > { %1472 = vst [vmem:[%s1863_s8 + $0x20] sm:$0xff] %v1412_v34   ;;  %1480 = vst [vmem:[%s1863_s8 + $0x60] sm:$0xff] %v1452_v35   ;;  %v933_v42 = vadd.f32 %v1532_v36, %v1853_v51  ;;  %v949_v43 = vadd.f32 %v1580_v37, %v1853_v51  ;;  %v1535_v44 = vadd.f32 %v1534_v40, %v1533_v38 }
 0x127   : > { %v1583_v45 = vadd.f32 %v1582_v41, %v1581_v39 }
 0x128   : > { %v934_v46 = vadd.f32 %v1535_v44, %v1853_v51  ;;  %v965_v48 = vmax.f32 %v933_v42, 0.0  ;;  %v981_v49 = vmax.f32 %v949_v43, 0.0 }
 0x129   : > { %v950_v47 = vadd.f32 %v1583_v45, %v1853_v51 }
 0x12a   : > { %v966_v50 = vmax.f32 %v934_v46, 0.0  ;;  %v1536_v53 = vpop.f32.mrb[24].mxu0  ;;  %v1584_v54 = vpop.f32.mrb[24].mxu1 }
 0x12b   : > { %v982_v52 = vmax.f32 %v950_v47, 0.0  ;;  %v1537_v55 = vpop.f32.mrb[25].mxu0  ;;  %v1585_v56 = vpop.f32.mrb[25].mxu1 }
 0x12c   : > { %v1417_v57 = vpack.c.bf16 %v966_v50, %v965_v48  ;;  %v1538_v59 = vadd.f32 %v1537_v55, %v1536_v53  ;;  %v1586_v60 = vadd.f32 %v1585_v56, %v1584_v54  ;;  %v1539_v61 = vpop.f32.mrb[26].mxu0  ;;  %v1587_v62 = vpop.f32.mrb[26].mxu1 }
 0x12d   : > { %v1457_v58 = vpack.c.bf16 %v982_v52, %v981_v49  ;;  %v1540_v63 = vpop.f32.mrb[27].mxu0  ;;  %v1588_v0 = vpop.f32.mrb[27].mxu1 }
 0x12e   : > { %1473 = vst [vmem:[%s1863_s8 + $0x28] sm:$0xff] %v1417_v57   ;;  %v935_v1 = vadd.f32 %v1538_v59, %v1853_v51  ;;  %v951_v2 = vadd.f32 %v1586_v60, %v1853_v51  ;;  %v1541_v3 = vadd.f32 %v1540_v63, %v1539_v61  ;;  %v1589_v4 = vadd.f32 %v1588_v0, %v1587_v62 }
 0x12f   : > { %1481 = vst [vmem:[%s1863_s8 + $0x68] sm:$0xff] %v1457_v58  }
 0x130   : > { %v936_v5 = vadd.f32 %v1541_v3, %v1853_v51  ;;  %v952_v6 = vadd.f32 %v1589_v4, %v1853_v51  ;;  %v967_v7 = vmax.f32 %v935_v1, 0.0  ;;  %v983_v8 = vmax.f32 %v951_v2, 0.0 }
 0x132   : > { %v968_v9 = vmax.f32 %v936_v5, 0.0  ;;  %v984_v10 = vmax.f32 %v952_v6, 0.0  ;;  %v1542_v11 = vpop.f32.mrb[28].mxu0  ;;  %v1590_v12 = vpop.f32.mrb[28].mxu1 }
 0x133   : > { %v1543_v13 = vpop.f32.mrb[29].mxu0  ;;  %v1591_v14 = vpop.f32.mrb[29].mxu1 }
 0x134   : > { %v1422_v15 = vpack.c.bf16 %v968_v9, %v967_v7  ;;  %v1462_v16 = vpack.c.bf16 %v984_v10, %v983_v8  ;;  %v1544_v17 = vadd.f32 %v1543_v13, %v1542_v11  ;;  %v1592_v18 = vadd.f32 %v1591_v14, %v1590_v12  ;;  %v1545_v19 = vpop.f32.mrb[30].mxu0  ;;  %v1593_v20 = vpop.f32.mrb[30].mxu1 }
 0x135   : > { %v1546_v21 = vpop.f32.mrb[31].mxu0  ;;  %v1594_v22 = vpop.f32.mrb[31].mxu1 }
 0x136   : > { %1474 = vst [vmem:[%s1863_s8 + $0x30] sm:$0xff] %v1422_v15   ;;  %1482 = vst [vmem:[%s1863_s8 + $0x70] sm:$0xff] %v1462_v16   ;;  %v937_v23 = vadd.f32 %v1544_v17, %v1853_v51  ;;  %v953_v24 = vadd.f32 %v1592_v18, %v1853_v51  ;;  %v1547_v25 = vadd.f32 %v1546_v21, %v1545_v19 }
 0x137   : > { %v1595_v26 = vadd.f32 %v1594_v22, %v1593_v20 }
 0x138   : > { %v938_v27 = vadd.f32 %v1547_v25, %v1853_v51  ;;  %v969_v29 = vmax.f32 %v937_v23, 0.0  ;;  %v985_v30 = vmax.f32 %v953_v24, 0.0 }
 0x139   : > { %v954_v28 = vadd.f32 %v1595_v26, %v1853_v51 }
 0x13a   : > { %v970_v31 = vmax.f32 %v938_v27, 0.0 }
 0x13b   : > { %v986_v32 = vmax.f32 %v954_v28, 0.0 }
 0x13c   : > { %v1427_v33 = vpack.c.bf16 %v970_v31, %v969_v29 }
 0x13d   : > { %v1467_v34 = vpack.c.bf16 %v986_v32, %v985_v30 }
 0x13e   : > { %1475 = vst [vmem:[%s1863_s8 + $0x38] sm:$0xff] %v1427_v33  }
 0x13f   : > { %1483 = vst [vmem:[%s1863_s8 + $0x78] sm:$0xff] %v1467_v34  }
 0x140 PF: > { %s13_s14 = sadd.s32 1, %s1722_s14   ;;  %s1922_s12 = smov %s1718_s13 }
 0x141   : > { %p10_p5 = scmp.ge.s32.totalorder %s13_s14, 4   ;;  %s1923_s13 = smov %s1925_s15 }
 0x143   :  { %12 = sbr.rel (!%p10_p5) target bundleno = 2 (0x2), region = 76 }

// kernel: googlenet_fwd.5
= control target key start
LH: loop header
LB: loop body
LE: loop exit
PB: predicated region body
PF: predicated region fallthrough
CT: control target
= control target key end

     0   :  { %s2494_s0 = inlined_call_operand.vmem [shape: bf16[128,768], index: 0, kind: input, shape index: {}]   ;;  %s2495_s1 = inlined_call_operand.vmem [shape: bf16[768,256], index: 1, kind: input, shape index: {}]   ;;  %s2496_s2 = inlined_call_operand.vmem [shape: f32[1,256], index: 2, kind: input, shape index: {}]   ;;  %s2497_s3 = inlined_call_operand.vmem [shape: bf16[128,256], index: 3, kind: output, shape index: {}]  }
   0x1   :  { %2499 = sst [smem:[#allocation7_spill]] %s2494_s0 }
   0x2   :  { %2500 = sst [smem:[#allocation8_spill]] %s2495_s1 }
   0x3   :  { %s2075_s12 = smov 0   ;;  %s2077_s13 = smov 0  }
   0x4   :  { %s2079_s14 = smov 0   ;;  %s2081_s15 = smov 0  }
   0x5   :  { %s2083_s16 = smov 0   ;;  %s2085_s17 = smov 0  }
   0x6   :  { %s2087_s18 = smov 0   ;;  %s2089_s19 = smov 0  }
   0x7   :  { %s2091_s20 = smov 0   ;;  %s2093_s21 = smov 0  }
   0x8   :  { %s2095_s22 = smov 0  }
   0x9 LB: > { %s1528_s23 = sadd.s32 4294967295, %s2052_s22   ;;  %s25_s24 = sadd.s32 1, %s2044_s20  ;;  %s2052_s22 = sphi %s2095_s22, %s13_s22   ;;  %s2048_s21 = sphi %s2093_s21, %s2517_s21   ;;  %s2044_s20 = sphi %s2091_s20, %s2516_s20   ;;  %s2040_s19 = sphi %s2089_s19, %s2515_s19   ;;  %s2036_s18 = sphi %s2087_s18, %s2514_s18   ;;  %s2032_s17 = sphi %s2085_s17, %s2513_s17   ;;  %s2028_s16 = sphi %s2083_s16, %s2512_s16   ;;  %s2024_s15 = sphi %s2081_s15, %s2511_s15   ;;  %s2020_s14 = sphi %s2079_s14, %s2510_s14   ;;  %s2016_s13 = sphi %s2077_s13, %s2509_s13   ;;  %s2012_s12 = sphi %s2075_s12, %s2508_s12  }
   0xa   : > { %p26_p0 = scmp.ge.s32.totalorder %s25_s24, 2  ;;  %s28_s25 = sadd.s32 1, %s2048_s21 }
   0xb   : > { %s41_s26 = sadd.s32 1, %s2032_s17  ;;  %p48_p1 = scmp.ne.s32.totalorder %s2032_s17, %s2028_s16 }
   0xc   : > { %s2519_s24 = smov (%p26_p0, %s25_s24), 0  ;;  %s2521_s25 = smov (!%p26_p0, %s28_s25), %s2048_s21 }
   0xd   : > { %s37_s27 = ssub.s32 %s2044_s20, %s2519_s24  ;;  %p49_p2 = scmp.eq.s32.totalorder %s2052_s22, 0 }
   0xe   : > { %p30_p3 = scmp.ge.s32.totalorder %s2521_s25, 2  ;;  %p39_p4 = scmp.eq.s32.totalorder %s37_s27, 0 }
   0xf   : > { %p2142_p5 = por %p49_p2, %p48_p1  ;;  %s69_s29 = sadd.s32 1, %s2024_s15 }
  0x10   : > { %s2523_s25 = smov (%p30_p3, %s2521_s25), 0  ;;  %p76_p6 = scmp.ne.s32.totalorder %s2024_s15, %s2020_s14 }
  0x11   : > { %2502 = sst [smem:[#allocation6_spill]] %s2523_s25  ;;  %s65_s4 = ssub.s32 %s2048_s21, %s2523_s25 }
  0x12   : > { %s2150_s30 = scalar_select %p39_p4, %s2032_s17, %s41_s26  }
  0x13   : > { %s66_s5 = sor.u32 %s65_s4, %s37_s27  ;;  %p121_p7 = scmp.eq.s32.totalorder %s65_s4, 0 }
  0x14   : > { %p67_p8 = scmp.eq.s32.totalorder %s66_s5, 0  ;;  %p2156_p9 = por %p76_p6, %p49_p2 }
  0x15   : > { %s123_s7 = sadd.s32 1, %s2016_s13  ;;  %p133_p10 = scmp.ne.s32.totalorder %s2016_s13, %s2012_s12 }
  0x16   : > { %s2164_s8 = scalar_select %p67_p8, %s2024_s15, %s69_s29  }
  0x17   : > { %s2167_s9 = scalar_select %p121_p7, %s2016_s13, %s123_s7  }
  0x18   : > { %p134_p11 = scmp.eq.s32.totalorder %s1528_s23, 3  ;;  %p1531_p13 = scmp.ge.s32.totalorder %s2052_s22, 4 }
  0x1a   : > { %p2169_p12 = por %p134_p11, %p133_p10  ;;  %156 = sbr.rel (%p1531_p13) target bundleno = 101 (0x65), region = 16 }
  0x21   : > { %159 = sbr.rel (!%p2142_p5) target bundleno = 60 (0x3c), region = 20  ;;  %s161_s11 = sand.u32 (%p2142_p5), 1, %s2032_s17  }
  0x22   : > { %s1640_s26 = smul.u32 (%p2142_p5), 12, %s2044_s20  ;;  %s2505_s0 = sld [smem:[#allocation7_spill]] (%p2142_p5) }
  0x23   : > { %s1817_s27 = smul.u32 (%p2142_p5), 192, %s161_s11 }
  0x25   : > { %s2186_s23 = scalar_lea.vmem (%p2142_p5), [#allocation3], %s1817_s27 }
  0x28   : > { %s2181_s5 = scalar_lea.vmem %s2505_s0, %s1640_s26 }
  0x29   : > { %v184_v0 = vld [vmem:[%s2181_s5] sm:$0xff]  ;;  %v186_v1 = vld [vmem:[%s2181_s5 + $0x18] sm:$0xff]  ;;  %v188_v2 = vld [vmem:[%s2181_s5 + $0x30] sm:$0xff] }
  0x2a   : > { %185 = vst [vmem:[%s2186_s23] sm:$0xff] %v184_v0  ;;  %187 = vst [vmem:[%s2186_s23 + $0xc] sm:$0xff] %v186_v1  ;;  %v190_v3 = vld [vmem:[%s2181_s5 + $0x48] sm:$0xff]  ;;  %v192_v4 = vld [vmem:[%s2181_s5 + $0x60] sm:$0xff] }
  0x2b   : > { %189 = vst [vmem:[%s2186_s23 + $0x18] sm:$0xff] %v188_v2  ;;  %v194_v5 = vld [vmem:[%s2181_s5 + $0x78] sm:$0xff]  ;;  %191 = vst [vmem:[%s2186_s23 + $0x24] sm:$0xff] %v190_v3  ;;  %v196_v6 = vld [vmem:[%s2181_s5 + $0x90] sm:$0xff] }
  0x2c   : > { %193 = vst [vmem:[%s2186_s23 + $0x30] sm:$0xff] %v192_v4  ;;  %195 = vst [vmem:[%s2186_s23 + $0x3c] sm:$0xff] %v194_v5  ;;  %v198_v7 = vld [vmem:[%s2181_s5 + $0xa8] sm:$0xff]  ;;  %v200_v8 = vld [vmem:[%s2181_s5 + $0xc0] sm:$0xff] }
  0x2d   : > { %197 = vst [vmem:[%s2186_s23 + $0x48] sm:$0xff] %v196_v6  ;;  %199 = vst [vmem:[%s2186_s23 + $0x54] sm:$0xff] %v198_v7  ;;  %v202_v9 = vld [vmem:[%s2181_s5 + $0xd8] sm:$0xff]  ;;  %v204_v10 = vld [vmem:[%s2181_s5 + $0xf0] sm:$0xff] }
  0x2e   : > { %201 = vst [vmem:[%s2186_s23 + $0x60] sm:$0xff] %v200_v8  ;;  %v206_v11 = vld [vmem:[%s2181_s5 + $0x108] sm:$0xff]  ;;  %203 = vst [vmem:[%s2186_s23 + $0x6c] sm:$0xff] %v202_v9  ;;  %v208_v12 = vld [vmem:[%s2181_s5 + $0x120] sm:$0xff] }
  0x2f   : > { %205 = vst [vmem:[%s2186_s23 + $0x78] sm:$0xff] %v204_v10  ;;  %207 = vst [vmem:[%s2186_s23 + $0x84] sm:$0xff] %v206_v11  ;;  %v210_v13 = vld [vmem:[%s2181_s5 + $0x138] sm:$0xff]  ;;  %v212_v14 = vld [vmem:[%s2181_s5 + $0x150] sm:$0xff] }
  0x30   : > { %209 = vst [vmem:[%s2186_s23 + $0x90] sm:$0xff] %v208_v12  ;;  %211 = vst [vmem:[%s2186_s23 + $0x9c] sm:$0xff] %v210_v13  ;;  %v214_v15 = vld [vmem:[%s2181_s5 + $0x168] sm:$0xff]  ;;  %v1535_v17 = vld [vmem:[%s2181_s5 + $0x20] sm:$0xf] }
  0x31   : > { %213 = vst [vmem:[%s2186_s23 + $0xa8] sm:$0xff] %v212_v14  ;;  %v1533_v16 = vld [vmem:[%s2181_s5 + $0x8] sm:$0xf]  ;;  %215 = vst [vmem:[%s2186_s23 + $0xb4] sm:$0xff] %v214_v15  ;;  %v1537_v18 = vld [vmem:[%s2181_s5 + $0x38] sm:$0xf] }
  0x32   : > { %1534 = vst [vmem:[%s2186_s23 + $0x8] sm:$0xf] %v1533_v16  ;;  %1536 = vst [vmem:[%s2186_s23 + $0x14] sm:$0xf] %v1535_v17  ;;  %v1539_v19 = vld [vmem:[%s2181_s5 + $0x50] sm:$0xf] }
  0x33   : > { %v1541_v20 = vld [vmem:[%s2181_s5 + $0x68] sm:$0xf]  ;;  %1538 = vst [vmem:[%s2186_s23 + $0x20] sm:$0xf] %v1537_v18  ;;  %1540 = vst [vmem:[%s2186_s23 + $0x2c] sm:$0xf] %v1539_v19 }
  0x34   : > { %1542 = vst [vmem:[%s2186_s23 + $0x38] sm:$0xf] %v1541_v20  ;;  %v1543_v21 = vld [vmem:[%s2181_s5 + $0x80] sm:$0xf]  ;;  %v1545_v22 = vld [vmem:[%s2181_s5 + $0x98] sm:$0xf] }
  0x35   : > { %v1547_v23 = vld [vmem:[%s2181_s5 + $0xb0] sm:$0xf]  ;;  %1544 = vst [vmem:[%s2186_s23 + $0x44] sm:$0xf] %v1543_v21  ;;  %1546 = vst [vmem:[%s2186_s23 + $0x50] sm:$0xf] %v1545_v22 }
  0x36   : > { %1548 = vst [vmem:[%s2186_s23 + $0x5c] sm:$0xf] %v1547_v23  ;;  %v1549_v24 = vld [vmem:[%s2181_s5 + $0xc8] sm:$0xf]  ;;  %v1551_v25 = vld [vmem:[%s2181_s5 + $0xe0] sm:$0xf] }
  0x37   : > { %v1553_v26 = vld [vmem:[%s2181_s5 + $0xf8] sm:$0xf]  ;;  %1550 = vst [vmem:[%s2186_s23 + $0x68] sm:$0xf] %v1549_v24  ;;  %1552 = vst [vmem:[%s2186_s23 + $0x74] sm:$0xf] %v1551_v25 }
  0x38   : > { %1554 = vst [vmem:[%s2186_s23 + $0x80] sm:$0xf] %v1553_v26  ;;  %v1555_v27 = vld [vmem:[%s2181_s5 + $0x110] sm:$0xf]  ;;  %v1557_v28 = vld [vmem:[%s2181_s5 + $0x128] sm:$0xf] }
  0x39   : > { %v1559_v29 = vld [vmem:[%s2181_s5 + $0x140] sm:$0xf]  ;;  %1556 = vst [vmem:[%s2186_s23 + $0x8c] sm:$0xf] %v1555_v27  ;;  %1558 = vst [vmem:[%s2186_s23 + $0x98] sm:$0xf] %v1557_v28 }
  0x3a   : > { %1560 = vst [vmem:[%s2186_s23 + $0xa4] sm:$0xf] %v1559_v29  ;;  %v1561_v30 = vld [vmem:[%s2181_s5 + $0x158] sm:$0xf]  ;;  %v1563_v31 = vld [vmem:[%s2181_s5 + $0x170] sm:$0xf] }
  0x3b   : > { %1562 = vst [vmem:[%s2186_s23 + $0xb0] sm:$0xf] %v1561_v30  ;;  %1564 = vst [vmem:[%s2186_s23 + $0xbc] sm:$0xf] %v1563_v31 }
  0x3c PF: > { %260 = sbr.rel (!%p2156_p9) target bundleno = 101 (0x65), region = 46  ;;  %s262_s28 = sand.u32 (%p2156_p9), 1, %s2024_s15  }
  0x3d   : > { %s1641_s7 = smul.u32 (%p2156_p9), 96, %s2044_s20  ;;  %s2506_s1 = sld [smem:[#allocation8_spill]] (%p2156_p9) }
  0x3e   : > { %s1818_s11 = smul.u32 (%p2156_p9), 192, %s262_s28 }
  0x3f   : > { %s267_s26 = sadd.s32 (%p2156_p9), %s2048_s21, %s1641_s7 }
  0x40   : > { %s1566_s27 = sshll.u32 (%p2156_p9), %s267_s26, 2  ;;  %s2262_s6 = scalar_lea.vmem (%p2156_p9), [#allocation4], %s1818_s11 }
  0x43   : > { %s2257_s0 = scalar_lea.vmem %s2506_s1, %s1566_s27 }
  0x44   : > { %v285_v32 = vld [vmem:[%s2257_s0] sm:$0xf]  ;;  %v287_v33 = vld [vmem:[%s2257_s0 + $0x8] sm:$0xf]  ;;  %v289_v34 = vld [vmem:[%s2257_s0 + $0x10] sm:$0xf] }
  0x45   : > { %286 = vst [vmem:[%s2262_s6] sm:$0xf] %v285_v32  ;;  %288 = vst [vmem:[%s2262_s6 + $0x4] sm:$0xf] %v287_v33  ;;  %v291_v35 = vld [vmem:[%s2257_s0 + $0x18] sm:$0xf] }
  0x46   : > { %290 = vst [vmem:[%s2262_s6 + $0x8] sm:$0xf] %v289_v34  ;;  %v293_v36 = vld [vmem:[%s2257_s0 + $0x20] sm:$0xf]  ;;  %v295_v37 = vld [vmem:[%s2257_s0 + $0x28] sm:$0xf] }
  0x47   : > { %292 = vst [vmem:[%s2262_s6 + $0xc] sm:$0xf] %v291_v35  ;;  %294 = vst [vmem:[%s2262_s6 + $0x10] sm:$0xf] %v293_v36  ;;  %v297_v38 = vld [vmem:[%s2257_s0 + $0x30] sm:$0xf] }
  0x48   : > { %296 = vst [vmem:[%s2262_s6 + $0x14] sm:$0xf] %v295_v37  ;;  %v299_v39 = vld [vmem:[%s2257_s0 + $0x38] sm:$0xf]  ;;  %v301_v40 = vld [vmem:[%s2257_s0 + $0x40] sm:$0xf] }
  0x49   : > { %298 = vst [vmem:[%s2262_s6 + $0x18] sm:$0xf] %v297_v38  ;;  %300 = vst [vmem:[%s2262_s6 + $0x1c] sm:$0xf] %v299_v39  ;;  %v303_v41 = vld [vmem:[%s2257_s0 + $0x48] sm:$0xf] }
  0x4a   : > { %302 = vst [vmem:[%s2262_s6 + $0x20] sm:$0xf] %v301_v40  ;;  %v305_v42 = vld [vmem:[%s2257_s0 + $0x50] sm:$0xf]  ;;  %v307_v43 = vld [vmem:[%s2257_s0 + $0x58] sm:$0xf] }
  0x4b   : > { %304 = vst [vmem:[%s2262_s6 + $0x24] sm:$0xf] %v303_v41  ;;  %306 = vst [vmem:[%s2262_s6 + $0x28] sm:$0xf] %v305_v42  ;;  %v309_v44 = vld [vmem:[%s2257_s0 + $0x60] sm:$0xf] }
  0x4c   : > { %308 = vst [vmem:[%s2262_s6 + $0x2c] sm:$0xf] %v307_v43  ;;  %v311_v45 = vld [vmem:[%s2257_s0 + $0x68] sm:$0xf]  ;;  %v313_v46 = vld [vmem:[%s2257_s0 + $0x70] sm:$0xf] }
  0x4d   : > { %310 = vst [vmem:[%s2262_s6 + $0x30] sm:$0xf] %v309_v44  ;;  %312 = vst [vmem:[%s2262_s6 + $0x34] sm:$0xf] %v311_v45  ;;  %v315_v47 = vld [vmem:[%s2257_s0 + $0x78] sm:$0xf] }
  0x4e   : > { %314 = vst [vmem:[%s2262_s6 + $0x38] sm:$0xf] %v313_v46  ;;  %v317_v48 = vld [vmem:[%s2257_s0 + $0x80] sm:$0xf]  ;;  %v319_v49 = vld [vmem:[%s2257_s0 + $0x88] sm:$0xf] }
  0x4f   : > { %316 = vst [vmem:[%s2262_s6 + $0x3c] sm:$0xf] %v315_v47  ;;  %318 = vst [vmem:[%s2262_s6 + $0x40] sm:$0xf] %v317_v48  ;;  %v321_v50 = vld [vmem:[%s2257_s0 + $0x90] sm:$0xf] }
  0x50   : > { %320 = vst [vmem:[%s2262_s6 + $0x44] sm:$0xf] %v319_v49  ;;  %v323_v51 = vld [vmem:[%s2257_s0 + $0x98] sm:$0xf]  ;;  %v325_v52 = vld [vmem:[%s2257_s0 + $0xa0] sm:$0xf] }
  0x51   : > { %322 = vst [vmem:[%s2262_s6 + $0x48] sm:$0xf] %v321_v50  ;;  %324 = vst [vmem:[%s2262_s6 + $0x4c] sm:$0xf] %v323_v51  ;;  %v327_v53 = vld [vmem:[%s2257_s0 + $0xa8] sm:$0xf] }
  0x52   : > { %326 = vst [vmem:[%s2262_s6 + $0x50] sm:$0xf] %v325_v52  ;;  %v329_v54 = vld [vmem:[%s2257_s0 + $0xb0] sm:$0xf]  ;;  %v331_v55 = vld [vmem:[%s2257_s0 + $0xb8] sm:$0xf] }
  0x53   : > { %328 = vst [vmem:[%s2262_s6 + $0x54] sm:$0xf] %v327_v53  ;;  %330 = vst [vmem:[%s2262_s6 + $0x58] sm:$0xf] %v329_v54  ;;  %v333_v56 = vld [vmem:[%s2257_s0 + $0xc0] sm:$0xf] }
  0x54   : > { %332 = vst [vmem:[%s2262_s6 + $0x5c] sm:$0xf] %v331_v55  ;;  %v335_v57 = vld [vmem:[%s2257_s0 + $0xc8] sm:$0xf]  ;;  %v337_v58 = vld [vmem:[%s2257_s0 + $0xd0] sm:$0xf] }
  0x55   : > { %334 = vst [vmem:[%s2262_s6 + $0x60] sm:$0xf] %v333_v56  ;;  %336 = vst [vmem:[%s2262_s6 + $0x64] sm:$0xf] %v335_v57  ;;  %v339_v59 = vld [vmem:[%s2257_s0 + $0xd8] sm:$0xf] }
  0x56   : > { %338 = vst [vmem:[%s2262_s6 + $0x68] sm:$0xf] %v337_v58  ;;  %v341_v60 = vld [vmem:[%s2257_s0 + $0xe0] sm:$0xf]  ;;  %v343_v61 = vld [vmem:[%s2257_s0 + $0xe8] sm:$0xf] }
  0x57   : > { %340 = vst [vmem:[%s2262_s6 + $0x6c] sm:$0xf] %v339_v59  ;;  %342 = vst [vmem:[%s2262_s6 + $0x70] sm:$0xf] %v341_v60  ;;  %v345_v62 = vld [vmem:[%s2257_s0 + $0xf0] sm:$0xf] }
  0x58   : > { %344 = vst [vmem:[%s2262_s6 + $0x74] sm:$0xf] %v343_v61  ;;  %v347_v63 = vld [vmem:[%s2257_s0 + $0xf8] sm:$0xf]  ;;  %v349_v0 = vld [vmem:[%s2257_s0 + $0x100] sm:$0xf] }
  0x59   : > { %346 = vst [vmem:[%s2262_s6 + $0x78] sm:$0xf] %v345_v62  ;;  %348 = vst [vmem:[%s2262_s6 + $0x7c] sm:$0xf] %v347_v63  ;;  %v351_v1 = vld [vmem:[%s2257_s0 + $0x108] sm:$0xf] }
  0x5a   : > { %350 = vst [vmem:[%s2262_s6 + $0x80] sm:$0xf] %v349_v0  ;;  %v353_v2 = vld [vmem:[%s2257_s0 + $0x110] sm:$0xf]  ;;  %v355_v3 = vld [vmem:[%s2257_s0 + $0x118] sm:$0xf] }
  0x5b   : > { %352 = vst [vmem:[%s2262_s6 + $0x84] sm:$0xf] %v351_v1  ;;  %354 = vst [vmem:[%s2262_s6 + $0x88] sm:$0xf] %v353_v2  ;;  %v357_v4 = vld [vmem:[%s2257_s0 + $0x120] sm:$0xf] }
  0x5c   : > { %356 = vst [vmem:[%s2262_s6 + $0x8c] sm:$0xf] %v355_v3  ;;  %v359_v5 = vld [vmem:[%s2257_s0 + $0x128] sm:$0xf]  ;;  %v361_v6 = vld [vmem:[%s2257_s0 + $0x130] sm:$0xf] }
  0x5d   : > { %358 = vst [vmem:[%s2262_s6 + $0x90] sm:$0xf] %v357_v4  ;;  %360 = vst [vmem:[%s2262_s6 + $0x94] sm:$0xf] %v359_v5  ;;  %v363_v7 = vld [vmem:[%s2257_s0 + $0x138] sm:$0xf] }
  0x5e   : > { %362 = vst [vmem:[%s2262_s6 + $0x98] sm:$0xf] %v361_v6  ;;  %v365_v8 = vld [vmem:[%s2257_s0 + $0x140] sm:$0xf]  ;;  %v367_v9 = vld [vmem:[%s2257_s0 + $0x148] sm:$0xf] }
  0x5f   : > { %364 = vst [vmem:[%s2262_s6 + $0x9c] sm:$0xf] %v363_v7  ;;  %366 = vst [vmem:[%s2262_s6 + $0xa0] sm:$0xf] %v365_v8  ;;  %v369_v10 = vld [vmem:[%s2257_s0 + $0x150] sm:$0xf] }
  0x60   : > { %368 = vst [vmem:[%s2262_s6 + $0xa4] sm:$0xf] %v367_v9  ;;  %v371_v11 = vld [vmem:[%s2257_s0 + $0x158] sm:$0xf]  ;;  %v373_v12 = vld [vmem:[%s2257_s0 + $0x160] sm:$0xf] }
  0x61   : > { %370 = vst [vmem:[%s2262_s6 + $0xa8] sm:$0xf] %v369_v10  ;;  %372 = vst [vmem:[%s2262_s6 + $0xac] sm:$0xf] %v371_v11  ;;  %v375_v13 = vld [vmem:[%s2257_s0 + $0x168] sm:$0xf] }
  0x62   : > { %374 = vst [vmem:[%s2262_s6 + $0xb0] sm:$0xf] %v373_v12  ;;  %v377_v14 = vld [vmem:[%s2257_s0 + $0x170] sm:$0xf]  ;;  %v379_v15 = vld [vmem:[%s2257_s0 + $0x178] sm:$0xf] }
  0x63   : > { %376 = vst [vmem:[%s2262_s6 + $0xb4] sm:$0xf] %v375_v13  ;;  %378 = vst [vmem:[%s2262_s6 + $0xb8] sm:$0xf] %v377_v14 }
  0x64   : > { %380 = vst [vmem:[%s2262_s6 + $0xbc] sm:$0xf] %v379_v15 }
  0x65 PF: > { %p1567_p0 = scmp.ge.s32.totalorder %s2052_s22, 1  ;;  %p504_p1 = scmp.lt.s32.totalorder %s2052_s22, 5 }
  0x67   : > { %p505_p2 = pnand %p1567_p0, %p504_p1 }
  0x68   : > { %s511_s5 = sand.u32 (!%p505_p2), 1, %s2028_s16   ;;  %s518_s23 = sand.u32 (!%p505_p2), 1, %s2020_s14  }
  0x69   : > { %508 = sbr.rel (%p505_p2) target bundleno = 459 (0x1cb), region = 91  ;;  %s544_s0 = sand.u32 (!%p505_p2), 1, %s2012_s12  }
  0x6a   : > { %s1819_s28 = smul.u32 (!%p505_p2), 192, %s511_s5  ;;  %s1568_s11 = sshll.u32 (!%p505_p2), %s544_s0, 6 }
  0x6b   : > { %s1820_s7 = smul.u32 (!%p505_p2), 192, %s518_s23  ;;  %p550_p3 = scmp.lt.s32.totalorder (!%p505_p2), %s2040_s19, 1 }
  0x6c   : > { %s2370_s6 = scalar_lea.vmem (!%p505_p2), [#allocation3], %s1819_s28  ;;  %s2374_s25 = scalar_lea.vmem (!%p505_p2), [#allocation5], %s1568_s11 }
  0x6d   : > { %s2372_s1 = scalar_lea.vmem (!%p505_p2), [#allocation4], %s1820_s7  ;;  %p1569_p4 = scmp.ne.s32.totalorder (!%p505_p2), %s2036_s18, 0 }
  0x70   : > { %s2364_s26 = scalar_select %p550_p3, %s2040_s19, 1 }
  0x71   : > { %558 = sbr.rel (%p1569_p4) target bundleno = 122 (0x7a), region = 103  ;;  %v2054_v16 = vmov (!%p1569_p4), 0.0  }
  0x72   : > { %s552_s4 = scalar_lea.vmem %s2496_s2, %s2364_s26  ;;  %559 = vst [vmem:[#allocation2] sm:$0xff] (!%p1569_p4), %v2054_v16  ;;  %560 = vst [vmem:[#allocation2 + $0x8] sm:$0xff] (!%p1569_p4), %v2054_v16 }
  0x73   : > { %561 = vst [vmem:[#allocation2 + $0x10] sm:$0xff] (!%p1569_p4), %v2054_v16  ;;  %562 = vst [vmem:[#allocation2 + $0x18] sm:$0xff] (!%p1569_p4), %v2054_v16 }
  0x74   : > { %563 = vst [vmem:[#allocation2 + $0x20] sm:$0xff] (!%p1569_p4), %v2054_v16  ;;  %564 = vst [vmem:[#allocation2 + $0x28] sm:$0xff] (!%p1569_p4), %v2054_v16 }
  0x75   : > { %565 = vst [vmem:[#allocation2 + $0x30] sm:$0xff] (!%p1569_p4), %v2054_v16  ;;  %566 = vst [vmem:[#allocation2 + $0x38] sm:$0xff] (!%p1569_p4), %v2054_v16 }
  0x76   : > { %567 = vst [vmem:[#allocation2 + $0x40] sm:$0xff] (!%p1569_p4), %v2054_v16  ;;  %568 = vst [vmem:[#allocation2 + $0x48] sm:$0xff] (!%p1569_p4), %v2054_v16 }
  0x77   : > { %569 = vst [vmem:[#allocation2 + $0x50] sm:$0xff] (!%p1569_p4), %v2054_v16  ;;  %570 = vst [vmem:[#allocation2 + $0x58] sm:$0xff] (!%p1569_p4), %v2054_v16 }
  0x78   : > { %571 = vst [vmem:[#allocation2 + $0x60] sm:$0xff] %v2054_v16  ;;  %572 = vst [vmem:[#allocation2 + $0x68] sm:$0xff] %v2054_v16 }
  0x79   : > { %573 = vst [vmem:[#allocation2 + $0x70] sm:$0xff] %v2054_v16  ;;  %574 = vst [vmem:[#allocation2 + $0x78] sm:$0xff] %v2054_v16 }
  0x7a PF: > { %v1910_v17 = vld [vmem:[%s2372_s1 + $0x40] sm:$0xff]   ;;  %v1913_v20 = vld [vmem:[%s2372_s1 + $0x48] sm:$0xff]   ;;  %v1916_v23 = vld [vmem:[%s2372_s1 + $0x50] sm:$0xff]   ;;  %p1618_p5 = scmp.ne.s32.totalorder %s2036_s18, 1 }
  0x7b   : > { %v1911_v18 = vld [vmem:[%s2372_s1] sm:$0xff]   ;;  %1705 = vmatprep.subr.bf16.mxu0 %v1910_v17  ;;  %v1914_v21 = vld [vmem:[%s2372_s1 + $0x8] sm:$0xff]   ;;  %v1917_v24 = vld [vmem:[%s2372_s1 + $0x10] sm:$0xff]  }
  0x7c   : > { %v1912_v19 = vld [vmem:[%s2372_s1 + $0x80] sm:$0xff]   ;;  %1706 = vmatpush3.bf16.msra.mxu0 %v1911_v18  ;;  %v1915_v22 = vld [vmem:[%s2372_s1 + $0x88] sm:$0xff]   ;;  %v1918_v25 = vld [vmem:[%s2372_s1 + $0x90] sm:$0xff]  }
  0x7d   : > { %1785 = vmatprep.subr.bf16.mxu1 %v1912_v19  ;;  %1707 = vmatprep.subr.bf16.mxu0 %v1913_v20  ;;  %v1919_v26 = vld [vmem:[%s2372_s1 + $0x58] sm:$0xff]   ;;  %v1922_v29 = vld [vmem:[%s2372_s1 + $0x60] sm:$0xff]   ;;  %v1925_v32 = vld [vmem:[%s2372_s1 + $0x68] sm:$0xff]  }
  0x7e   : > { %1786 = vmatpush3.bf16.msra.mxu1 %v1912_v19  ;;  %v1920_v27 = vld [vmem:[%s2372_s1 + $0x18] sm:$0xff]   ;;  %v1924_v30 = vld [vmem:[%s2372_s1 + $0xa0] sm:$0xff]   ;;  %v1927_v33 = vld [vmem:[%s2372_s1 + $0xa8] sm:$0xff]  }
  0x7f   : > { %1787 = vmatprep.subr.bf16.mxu1 %v1915_v22  ;;  %v1921_v28 = vld [vmem:[%s2372_s1 + $0x98] sm:$0xff]   ;;  %v1923_v31 = vld [vmem:[%s2372_s1 + $0x20] sm:$0xff]   ;;  %v1926_v34 = vld [vmem:[%s2372_s1 + $0x28] sm:$0xff]  }
  0x80   : > { %1708 = vmatpush3.bf16.msra.mxu0 %v1914_v21  ;;  %v1928_v35 = vld [vmem:[%s2372_s1 + $0x70] sm:$0xff]   ;;  %v1931_v38 = vld [vmem:[%s2372_s1 + $0x78] sm:$0xff]   ;;  %v1934_v43 = vld [vmem:[%s2370_s6] ss:$12 sps:$4 sm:$0xff]  }
  0x81   : > { %1709 = vmatprep.subr.bf16.mxu0 %v1916_v23  ;;  %v1929_v36 = vld [vmem:[%s2372_s1 + $0x30] sm:$0xff]   ;;  %v1933_v39 = vld [vmem:[%s2372_s1 + $0xb8] sm:$0xff]   ;;  %v1938_v45 = vld [vmem:[%s2370_s6 + $0x20] ss:$12 sps:$4 sm:$0xff]  }
  0x82   : > { %1788 = vmatpush3.bf16.msra.mxu1 %v1915_v22  ;;  %v1930_v37 = vld [vmem:[%s2372_s1 + $0xb0] sm:$0xff]   ;;  %v1932_v42 = vld [vmem:[%s2372_s1 + $0x38] sm:$0xff]   ;;  %v1954_v53 = vld [vmem:[%s2370_s6 + $0x80] ss:$12 sps:$4 sm:$0xff]  }
  0x83   : > { %1789 = vmatprep.subr.bf16.mxu1 %v1918_v25  ;;  %v1936_v40 = vld [vmem:[%s2370_s6 + $0x4] ss:$12 sps:$4 sm:$0xff]   ;;  %v1937_v41 = vld [vmem:[%s2370_s6 + $0x8] ss:$12 sps:$4 sm:$0xff]   ;;  %v1947_v52 = vld [vmem:[%s2370_s6 + $0x4c] ss:$12 sps:$4 sm:$0xff]  }
  0x84   : > { %1710 = vmatpush3.bf16.msra.mxu0 %v1917_v24  ;;  %975 = vmatprep.mubr.bf16.mxu0 %v1936_v40  ;;  %v1939_v44 = vld [vmem:[%s2370_s6 + $0x1c] ss:$12 sps:$4 sm:$0xff]   ;;  %v1945_v46 = vld [vmem:[%s2370_s6 + $0x38] ss:$12 sps:$4 sm:$0xff]   ;;  %v1942_v48 = vld [vmem:[%s2370_s6 + $0x34] ss:$12 sps:$4 sm:$0xff]  }
  0x85   : > { %1711 = vmatprep.subr.bf16.mxu0 %v1919_v26  ;;  %1801 = vmatprep.mubr.bf16.mxu1 %v1937_v41  ;;  %v1941_v47 = vld [vmem:[%s2370_s6 + $0x18] ss:$12 sps:$4 sm:$0xff]   ;;  %v1946_v49 = vld [vmem:[%s2370_s6 + $0x50] ss:$12 sps:$4 sm:$0xff]   ;;  %v1953_v50 = vld [vmem:[%s2370_s6 + $0x68] ss:$12 sps:$4 sm:$0xff]  }
  0x86   : > { %1790 = vmatpush3.bf16.msra.mxu1 %v1918_v25  ;;  %v1944_v51 = vld [vmem:[%s2370_s6 + $0x30] ss:$12 sps:$4 sm:$0xff]   ;;  %v1961_v54 = vld [vmem:[%s2370_s6 + $0x98] ss:$12 sps:$4 sm:$0xff]   ;;  %v1949_v55 = vld [vmem:[%s2370_s6 + $0x48] ss:$12 sps:$4 sm:$0xff]  }
  0x87   : > { %1791 = vmatprep.subr.bf16.mxu1 %v1921_v28  ;;  %v1950_v56 = vld [vmem:[%s2370_s6 + $0x64] ss:$12 sps:$4 sm:$0xff]   ;;  %v1952_v58 = vld [vmem:[%s2370_s6 + $0x60] ss:$12 sps:$4 sm:$0xff]   ;;  %v1955_v59 = vld [vmem:[%s2370_s6 + $0x7c] ss:$12 sps:$4 sm:$0xff]  }
  0x88   : > { %1712 = vmatpush3.bf16.msra.mxu0 %v1920_v27  ;;  %v1962_v57 = vld [vmem:[%s2370_s6 + $0xb0] ss:$12 sps:$4 sm:$0xff]   ;;  %v1957_v60 = vld [vmem:[%s2370_s6 + $0x78] ss:$12 sps:$4 sm:$0xff]   ;;  %v1958_v61 = vld [vmem:[%s2370_s6 + $0x94] ss:$12 sps:$4 sm:$0xff]  }
  0x89   : > { %1713 = vmatprep.subr.bf16.mxu0 %v1922_v29  ;;  %v1960_v62 = vld [vmem:[%s2370_s6 + $0x90] ss:$12 sps:$4 sm:$0xff]   ;;  %v1963_v63 = vld [vmem:[%s2370_s6 + $0xac] ss:$12 sps:$4 sm:$0xff]   ;;  %v1965_v0 = vld [vmem:[%s2370_s6 + $0xa8] ss:$12 sps:$4 sm:$0xff]  }
  0x8a   : > { %1792 = vmatpush3.bf16.msra.mxu1 %v1921_v28  ;;  %v575_v7 = vld [vmem:[#allocation2] sm:$0xff]  ;;  %v576_v12 = vld [vmem:[#allocation2 + $0x8] sm:$0xff]  ;;  %v577_v22 = vld [vmem:[#allocation2 + $0x10] sm:$0xff] }
  0x8b   : > { %1793 = vmatprep.subr.bf16.mxu1 %v1924_v30  ;;  %v578_v28 = vld [vmem:[#allocation2 + $0x18] sm:$0xff] }
  0x8c   : > { %1714 = vmatpush3.bf16.msra.mxu0 %v1923_v31 }
  0x8d   : > { %1715 = vmatprep.subr.bf16.mxu0 %v1925_v32 }
  0x8e   : > { %1794 = vmatpush3.bf16.msra.mxu1 %v1924_v30 }
  0x8f   : > { %1795 = vmatprep.subr.bf16.mxu1 %v1927_v33 }
  0x90   : > { %1716 = vmatpush3.bf16.msra.mxu0 %v1926_v34 }
  0x91   : > { %1717 = vmatprep.subr.bf16.mxu0 %v1928_v35 }
  0x92   : > { %1796 = vmatpush3.bf16.msra.mxu1 %v1927_v33 }
  0x93   : > { %1797 = vmatprep.subr.bf16.mxu1 %v1930_v37 }
  0x94   : > { %1718 = vmatpush3.bf16.msra.mxu0 %v1929_v36 }
  0x95   : > { %1719 = vmatprep.subr.bf16.mxu0 %v1931_v38 }
  0x96   : > { %1798 = vmatpush3.bf16.msra.mxu1 %v1930_v37 }
  0x97   : > { %1799 = vmatprep.subr.bf16.mxu1 %v1933_v39 }
  0x98   : > { %1720 = vmatpush3.bf16.msra.mxu0 %v1932_v42 }
  0x9a   : > { %1800 = vmatpush3.bf16.msra.mxu1 %v1933_v39  ;;  %v579_v39 = vld [vmem:[#allocation2 + $0x20] sm:$0xff] }
  0x9b   : > { %976 = vmatmul.mubr.bf16.vlgmr.msra.gmra.mrb[0].mxu0 %v1934_v43 }
  0x9c   : > { %983 = vmatprep.mubr.bf16.mxu0 %v1939_v44  ;;  %v580_v44 = vld [vmem:[#allocation2 + $0x28] sm:$0xff] }
  0x9d   : > { %1802 = vmatmul.mubr.bf16.vlgmr.msra.gmra.mrb[0].mxu1 %v1938_v45 }
  0x9e   : > { %1805 = vmatprep.mubr.bf16.mxu1 %v1945_v46 }
  0xa3   : > { %984 = vmatmul.mubr.bf16.gmra.mrb[4].mxu0 %v1941_v47 }
  0xa4   : > { %991 = vmatprep.mubr.bf16.mxu0 %v1942_v48 }
  0xa5   : > { %1806 = vmatmul.mubr.bf16.gmra.mrb[4].mxu1 %v1946_v49 }
  0xa6   : > { %1809 = vmatprep.mubr.bf16.mxu1 %v1953_v50 }
  0xab   : > { %992 = vmatmul.mubr.bf16.gmra.mrb[8].mxu0 %v1944_v51 }
  0xac   : > { %999 = vmatprep.mubr.bf16.mxu0 %v1947_v52 }
  0xad   : > { %1810 = vmatmul.mubr.bf16.gmra.mrb[8].mxu1 %v1954_v53 }
  0xae   : > { %1813 = vmatprep.mubr.bf16.mxu1 %v1961_v54  ;;  %v581_v54 = vld [vmem:[#allocation2 + $0x30] sm:$0xff] }
  0xb3   : > { %1000 = vmatmul.mubr.bf16.gmra.mrb[12].mxu0 %v1949_v55 }
  0xb4   : > { %1007 = vmatprep.mubr.bf16.mxu0 %v1950_v56 }
  0xb5   : > { %1814 = vmatmul.mubr.bf16.gmra.mrb[12].mxu1 %v1962_v57 }
  0xbb   : > { %1008 = vmatmul.mubr.bf16.gmra.mrb[16].mxu0 %v1952_v58 }
  0xbc   : > { %1015 = vmatprep.mubr.bf16.mxu0 %v1955_v59 }
  0xc3   : > { %1016 = vmatmul.mubr.bf16.gmra.mrb[20].mxu0 %v1957_v60  ;;  %v582_v60 = vld [vmem:[#allocation2 + $0x38] sm:$0xff] }
  0xc4   : > { %1023 = vmatprep.mubr.bf16.mxu0 %v1958_v61 }
  0xcb   : > { %1024 = vmatmul.mubr.bf16.gmra.mrb[24].mxu0 %v1960_v62 }
  0xcc   : > { %1031 = vmatprep.mubr.bf16.mxu0 %v1963_v63 }
  0xd3   : > { %1032 = vmatmul.mubr.bf16.gmra.mrb[28].mxu0 %v1965_v0 }
 0x16e   : > { %v1721_v1 = vpop.f32.mrb[0].mxu0 }
 0x16f   : > { %v1722_v2 = vpop.f32.mrb[1].mxu0 }
 0x170   : > { %v1723_v3 = vadd.f32 %v1722_v2, %v1721_v1  ;;  %v1724_v4 = vpop.f32.mrb[2].mxu0  ;;  %v1803_v5 = vpop.f32.mrb[0].mxu1 }
 0x171   : > { %v1725_v6 = vpop.f32.mrb[3].mxu0  ;;  %v1074_v8 = vpop.f32.mrb[1].mxu1 }
 0x172   : > { %v1726_v9 = vadd.f32 %v1725_v6, %v1724_v4  ;;  %v1075_v10 = vadd.f32 %v1723_v3, %v1074_v8  ;;  %v1804_v11 = vpop.f32.mrb[2].mxu1  ;;  %v583_v6 = vld [vmem:[#allocation2 + $0x40] sm:$0xff] }
 0x173   : > { %v1077_v13 = vpop.f32.mrb[3].mxu1 }
 0x174   : > { %v1137_v14 = vadd.f32 %v1075_v10, %v575_v7  ;;  %v1078_v15 = vadd.f32 %v1726_v9, %v1077_v13  ;;  %v584_v9 = vld [vmem:[#allocation2 + $0x48] sm:$0xff] }
 0x176   : > { %1153 = vst [vmem:[#allocation2] sm:$0xff] %v1137_v14  ;;  %v1138_v16 = vadd.f32 %v1078_v15, %v576_v12  ;;  %v1727_v17 = vpop.f32.mrb[4].mxu0 }
 0x177   : > { %v1728_v18 = vpop.f32.mrb[5].mxu0 }
 0x178   : > { %1154 = vst [vmem:[#allocation2 + $0x8] sm:$0xff] %v1138_v16  ;;  %v1729_v19 = vadd.f32 %v1728_v18, %v1727_v17  ;;  %v1730_v20 = vpop.f32.mrb[6].mxu0  ;;  %v1807_v21 = vpop.f32.mrb[4].mxu1  ;;  %v585_v17 = vld [vmem:[#allocation2 + $0x50] sm:$0xff] }
 0x179   : > { %v1731_v23 = vpop.f32.mrb[7].mxu0  ;;  %v1090_v24 = vpop.f32.mrb[5].mxu1 }
 0x17a   : > { %v1083_v25 = vadd.f32 %v1803_v5, %v1729_v19  ;;  %v1732_v26 = vadd.f32 %v1731_v23, %v1730_v20  ;;  %v1808_v27 = vpop.f32.mrb[6].mxu1 }
 0x17b   : > { %v1093_v29 = vpop.f32.mrb[7].mxu1 }
 0x17c   : > { %v1139_v30 = vadd.f32 %v1083_v25, %v577_v22  ;;  %v1086_v31 = vadd.f32 %v1804_v11, %v1732_v26 }
 0x17e   : > { %1155 = vst [vmem:[#allocation2 + $0x10] sm:$0xff] %v1139_v30  ;;  %v1140_v32 = vadd.f32 %v1086_v31, %v578_v28  ;;  %v1733_v33 = vpop.f32.mrb[8].mxu0  ;;  %v587_v30 = vld [vmem:[#allocation2 + $0x60] sm:$0xff] }
 0x17f   : > { %v1734_v34 = vpop.f32.mrb[9].mxu0 }
 0x180   : > { %1156 = vst [vmem:[#allocation2 + $0x18] sm:$0xff] %v1140_v32  ;;  %v1735_v35 = vadd.f32 %v1734_v34, %v1733_v33  ;;  %v1736_v36 = vpop.f32.mrb[10].mxu0  ;;  %v1811_v37 = vpop.f32.mrb[8].mxu1  ;;  %v588_v33 = vld [vmem:[#allocation2 + $0x68] sm:$0xff] }
 0x181   : > { %v1737_v38 = vpop.f32.mrb[11].mxu0  ;;  %v1106_v40 = vpop.f32.mrb[9].mxu1 }
 0x182   : > { %v1738_v41 = vadd.f32 %v1737_v38, %v1736_v36  ;;  %v1091_v42 = vadd.f32 %v1735_v35, %v1090_v24  ;;  %v1812_v43 = vpop.f32.mrb[10].mxu1 }
 0x183   : > { %v1109_v45 = vpop.f32.mrb[11].mxu1 }
 0x184   : > { %v1141_v46 = vadd.f32 %v1091_v42, %v579_v39  ;;  %v1094_v47 = vadd.f32 %v1738_v41, %v1093_v29  ;;  %v589_v41 = vld [vmem:[#allocation2 + $0x70] sm:$0xff] }
 0x186   : > { %1157 = vst [vmem:[#allocation2 + $0x20] sm:$0xff] %v1141_v46  ;;  %v1142_v48 = vadd.f32 %v1094_v47, %v580_v44  ;;  %v1739_v49 = vpop.f32.mrb[12].mxu0 }
 0x187   : > { %v1740_v50 = vpop.f32.mrb[13].mxu0 }
 0x188   : > { %1158 = vst [vmem:[#allocation2 + $0x28] sm:$0xff] %v1142_v48  ;;  %v1741_v51 = vadd.f32 %v1740_v50, %v1739_v49  ;;  %v1742_v52 = vpop.f32.mrb[14].mxu0  ;;  %v1815_v53 = vpop.f32.mrb[12].mxu1  ;;  %v1173_v49 = vld [vmem:[#allocation2] sm:$0xff] (!%p1618_p5)  ;;  %v1174_v50 = vld [vmem:[#allocation2 + $0x8] sm:$0xff] (!%p1618_p5) }
 0x189   : > { %v1743_v55 = vpop.f32.mrb[15].mxu0  ;;  %v1122_v56 = vpop.f32.mrb[13].mxu1 }
 0x18a   : > { %v1099_v57 = vadd.f32 %v1807_v21, %v1741_v51  ;;  %v1744_v58 = vadd.f32 %v1743_v55, %v1742_v52  ;;  %v1816_v59 = vpop.f32.mrb[14].mxu1  ;;  %v586_v21 = vld [vmem:[#allocation2 + $0x58] sm:$0xff]  ;;  %v1619_v51 = vld [vmem:[%s552_s4] ss:$0 sm:$0xff] (!%p1618_p5) }
 0x18b   : > { %v1125_v61 = vpop.f32.mrb[15].mxu1  ;;  %v1196_v52 = vadd.f32 (!%p1618_p5), %v1619_v51, %v1173_v49  ;;  %v1176_v55 = vld [vmem:[#allocation2 + $0x18] sm:$0xff] (!%p1618_p5) }
 0x18c   : > { %v1143_v62 = vadd.f32 %v1099_v57, %v581_v54  ;;  %v1102_v63 = vadd.f32 %v1808_v27, %v1744_v58  ;;  %v1175_v54 = vld [vmem:[#allocation2 + $0x10] sm:$0xff] (!%p1618_p5)  ;;  %v1199_v58 = vadd.f32 (!%p1618_p5), %v1619_v51, %v1176_v55 }
 0x18d   : > { %v1198_v57 = vadd.f32 (!%p1618_p5), %v1619_v51, %v1175_v54 }
 0x18e   : > { %1159 = vst [vmem:[#allocation2 + $0x30] sm:$0xff] %v1143_v62  ;;  %v1144_v0 = vadd.f32 %v1102_v63, %v582_v60  ;;  %v1745_v1 = vpop.f32.mrb[16].mxu0  ;;  %v1212_v63 = vmax.f32 (!%p1618_p5), %v1196_v52, 0.0 }
 0x18f   : > { %v1746_v2 = vpop.f32.mrb[17].mxu0 }
 0x190   : > { %1160 = vst [vmem:[#allocation2 + $0x38] sm:$0xff] %v1144_v0  ;;  %v1747_v3 = vadd.f32 %v1746_v2, %v1745_v1  ;;  %v1748_v4 = vpop.f32.mrb[18].mxu0 }
 0x191   : > { %v1749_v5 = vpop.f32.mrb[19].mxu0 }
 0x192   : > { %v1750_v7 = vadd.f32 %v1749_v5, %v1748_v4  ;;  %v1107_v8 = vadd.f32 %v1747_v3, %v1106_v40 }
 0x194   : > { %v1145_v10 = vadd.f32 %v1107_v8, %v583_v6  ;;  %v1110_v11 = vadd.f32 %v1750_v7, %v1109_v45  ;;  %v590_v45 = vld [vmem:[#allocation2 + $0x78] sm:$0xff]  ;;  %v1214_v6 = vmax.f32 (!%p1618_p5), %v1198_v57, 0.0  ;;  %v1215_v7 = vmax.f32 (!%p1618_p5), %v1199_v58, 0.0 }
 0x196   : > { %1161 = vst [vmem:[#allocation2 + $0x40] sm:$0xff] %v1145_v10  ;;  %v1146_v12 = vadd.f32 %v1110_v11, %v584_v9  ;;  %v1751_v13 = vpop.f32.mrb[20].mxu0 }
 0x197   : > { %v1752_v14 = vpop.f32.mrb[21].mxu0  ;;  %v1180_v62 = vld [vmem:[#allocation2 + $0x38] sm:$0xff] (!%p1618_p5) }
 0x198   : > { %1162 = vst [vmem:[#allocation2 + $0x48] sm:$0xff] %v1146_v12  ;;  %v1753_v15 = vadd.f32 %v1752_v14, %v1751_v13  ;;  %v1754_v16 = vpop.f32.mrb[22].mxu0  ;;  %v1203_v9 = vadd.f32 (!%p1618_p5), %v1619_v51, %v1180_v62 }
 0x199   : > { %v1755_v18 = vpop.f32.mrb[23].mxu0 }
 0x19a   : > { %v1115_v19 = vadd.f32 %v1811_v37, %v1753_v15  ;;  %v1756_v20 = vadd.f32 %v1755_v18, %v1754_v16  ;;  %v1219_v18 = vmax.f32 (!%p1618_p5), %v1203_v9, 0.0 }
 0x19c   : > { %v1147_v22 = vadd.f32 %v1115_v19, %v585_v17  ;;  %v1118_v23 = vadd.f32 %v1812_v43, %v1756_v20  ;;  %v1666_v17 = vpack.c.bf16 (!%p1618_p5), %v1215_v7, %v1214_v6 }
 0x19d   : > { %v1181_v3 = vld [vmem:[#allocation2 + $0x40] sm:$0xff] (!%p1618_p5) }
 0x19e   : > { %1163 = vst [vmem:[#allocation2 + $0x50] sm:$0xff] %v1147_v22  ;;  %v1148_v24 = vadd.f32 %v1118_v23, %v586_v21  ;;  %v1757_v25 = vpop.f32.mrb[24].mxu0  ;;  %v1204_v15 = vadd.f32 (!%p1618_p5), %v1619_v51, %v1181_v3  ;;  %1698 = vst [vmem:[%s2374_s25 + $0x8] sm:$0xff] (!%p1618_p5), %v1666_v17  }
 0x19f   : > { %v1758_v26 = vpop.f32.mrb[25].mxu0  ;;  %v1182_v4 = vld [vmem:[#allocation2 + $0x48] sm:$0xff] (!%p1618_p5) }
 0x1a0   : > { %1164 = vst [vmem:[#allocation2 + $0x58] sm:$0xff] %v1148_v24  ;;  %v1759_v27 = vadd.f32 %v1758_v26, %v1757_v25  ;;  %v1760_v28 = vpop.f32.mrb[26].mxu0  ;;  %v1205_v19 = vadd.f32 (!%p1618_p5), %v1619_v51, %v1182_v4  ;;  %v1220_v24 = vmax.f32 (!%p1618_p5), %v1204_v15, 0.0 }
 0x1a1   : > { %v1761_v29 = vpop.f32.mrb[27].mxu0 }
 0x1a2   : > { %v1762_v31 = vadd.f32 %v1761_v29, %v1760_v28  ;;  %v1123_v32 = vadd.f32 %v1759_v27, %v1122_v56  ;;  %v1177_v56 = vld [vmem:[#allocation2 + $0x20] sm:$0xff] (!%p1618_p5)  ;;  %v1221_v28 = vmax.f32 (!%p1618_p5), %v1205_v19, 0.0 }
 0x1a3   : > { %v1200_v60 = vadd.f32 (!%p1618_p5), %v1619_v51, %v1177_v56 }
 0x1a4   : > { %v1149_v34 = vadd.f32 %v1123_v32, %v587_v30  ;;  %v1126_v35 = vadd.f32 %v1762_v31, %v1125_v61  ;;  %v1179_v61 = vld [vmem:[#allocation2 + $0x30] sm:$0xff] (!%p1618_p5) }
 0x1a5   : > { %v1202_v2 = vadd.f32 (!%p1618_p5), %v1619_v51, %v1179_v61  ;;  %v1183_v5 = vld [vmem:[#allocation2 + $0x50] sm:$0xff] (!%p1618_p5)  ;;  %v1216_v8 = vmax.f32 (!%p1618_p5), %v1200_v60, 0.0 }
 0x1a6   : > { %1165 = vst [vmem:[#allocation2 + $0x60] sm:$0xff] %v1149_v34  ;;  %v1150_v36 = vadd.f32 %v1126_v35, %v588_v33  ;;  %v1763_v37 = vpop.f32.mrb[28].mxu0  ;;  %v1206_v20 = vadd.f32 (!%p1618_p5), %v1619_v51, %v1183_v5  ;;  %v1681_v35 = vpack.c.bf16 (!%p1618_p5), %v1221_v28, %v1220_v24 }
 0x1a7   : > { %v1764_v38 = vpop.f32.mrb[29].mxu0  ;;  %v1184_v10 = vld [vmem:[#allocation2 + $0x58] sm:$0xff] (!%p1618_p5)  ;;  %v1218_v14 = vmax.f32 (!%p1618_p5), %v1202_v2, 0.0 }
 0x1a8   : > { %1166 = vst [vmem:[#allocation2 + $0x68] sm:$0xff] %v1150_v36  ;;  %v1765_v39 = vadd.f32 %v1764_v38, %v1763_v37  ;;  %v1766_v40 = vpop.f32.mrb[30].mxu0  ;;  %v1207_v25 = vadd.f32 (!%p1618_p5), %v1619_v51, %v1184_v10  ;;  %v1222_v29 = vmax.f32 (!%p1618_p5), %v1206_v20, 0.0  ;;  %1701 = vst [vmem:[%s2374_s25 + $0x20] sm:$0xff] (!%p1618_p5), %v1681_v35  }
 0x1a9   : > { %v1767_v42 = vpop.f32.mrb[31].mxu0  ;;  %v1676_v27 = vpack.c.bf16 (!%p1618_p5), %v1219_v18, %v1218_v14 }
 0x1aa   : > { %v1131_v43 = vadd.f32 %v1815_v53, %v1765_v39  ;;  %v1768_v44 = vadd.f32 %v1767_v42, %v1766_v40  ;;  %1172 = sbr.rel (%p1618_p5) target bundleno = 447 (0x1bf), region = 107  ;;  %v1197_v53 = vadd.f32 (!%p1618_p5), %v1619_v51, %v1174_v50  ;;  %v1223_v31 = vmax.f32 (!%p1618_p5), %v1207_v25, 0.0 }
 0x1ab   : > { %1700 = vst [vmem:[%s2374_s25 + $0x18] sm:$0xff] (!%p1618_p5), %v1676_v27  }
 0x1ac   : > { %v1151_v46 = vadd.f32 %v1131_v43, %v589_v41  ;;  %v1134_v47 = vadd.f32 %v1816_v59, %v1768_v44  ;;  %v1178_v59 = vld [vmem:[#allocation2 + $0x28] sm:$0xff] (!%p1618_p5)  ;;  %v1213_v0 = vmax.f32 (!%p1618_p5), %v1197_v53, 0.0  ;;  %v1686_v37 = vpack.c.bf16 (!%p1618_p5), %v1223_v31, %v1222_v29 }
 0x1ad   : > { %v1201_v1 = vadd.f32 (!%p1618_p5), %v1619_v51, %v1178_v59  ;;  %v1185_v11 = vld [vmem:[#allocation2 + $0x60] sm:$0xff] (!%p1618_p5) }
 0x1ae   : > { %1167 = vst [vmem:[#allocation2 + $0x70] sm:$0xff] %v1151_v46  ;;  %v1152_v48 = vadd.f32 %v1134_v47, %v590_v45  ;;  %v1661_v12 = vpack.c.bf16 (!%p1618_p5), %v1213_v0, %v1212_v63  ;;  %v1208_v26 = vadd.f32 (!%p1618_p5), %v1619_v51, %v1185_v11  ;;  %1702 = vst [vmem:[%s2374_s25 + $0x28] sm:$0xff] (!%p1618_p5), %v1686_v37  }
 0x1af   : > { %v1217_v13 = vmax.f32 (!%p1618_p5), %v1201_v1, 0.0  ;;  %v1186_v16 = vld [vmem:[#allocation2 + $0x68] sm:$0xff] (!%p1618_p5) }
 0x1b0   : > { %1168 = vst [vmem:[#allocation2 + $0x78] sm:$0xff] %v1152_v48  ;;  %1662 = vst [vmem:[%s2374_s25] sm:$0xff] (!%p1618_p5), %v1661_v12   ;;  %v1209_v30 = vadd.f32 (!%p1618_p5), %v1619_v51, %v1186_v16  ;;  %v1224_v32 = vmax.f32 (!%p1618_p5), %v1208_v26, 0.0 }
 0x1b1   : > { %v1671_v23 = vpack.c.bf16 %v1217_v13, %v1216_v8 }
 0x1b2   : > { %v1225_v36 = vmax.f32 %v1209_v30, 0.0 }
 0x1b3   : > { %1699 = vst [vmem:[%s2374_s25 + $0x10] sm:$0xff] %v1671_v23  }
 0x1b4   : > { %v1691_v40 = vpack.c.bf16 %v1225_v36, %v1224_v32 }
 0x1b5   : > { %v1187_v21 = vld [vmem:[#allocation2 + $0x70] sm:$0xff] }
 0x1b6   : > { %v1210_v33 = vadd.f32 %v1619_v51, %v1187_v21  ;;  %1703 = vst [vmem:[%s2374_s25 + $0x30] sm:$0xff] %v1691_v40  }
 0x1b7   : > { %v1188_v22 = vld [vmem:[#allocation2 + $0x78] sm:$0xff] }
 0x1b8   : > { %v1211_v34 = vadd.f32 %v1619_v51, %v1188_v22  ;;  %v1226_v38 = vmax.f32 %v1210_v33, 0.0 }
 0x1ba   : > { %v1227_v39 = vmax.f32 %v1211_v34, 0.0 }
 0x1bc   : > { %v1696_v41 = vpack.c.bf16 %v1227_v39, %v1226_v38 }
 0x1be   : > { %1704 = vst [vmem:[%s2374_s25 + $0x38] sm:$0xff] %v1696_v41  }
 0x1bf PF: > { %1314 = sbr.rel (!%p2169_p12) target bundleno = 459 (0x1cb), region = 111  ;;  %s1637_s14 = sshll.u32 (%p2169_p12), %s2040_s19, 2  ;;  %v1339_v44 = vld [vmem:[%s2374_s25 + $0x8] sm:$0xf] (%p2169_p12)  ;;  %v1341_v45 = vld [vmem:[%s2374_s25 + $0xc] sm:$0xf] (%p2169_p12) }
 0x1c0   : > { %s1319_s5 = scalar_lea.vmem (%p2169_p12), %s2497_s3, %s1637_s14  ;;  %v1343_v46 = vld [vmem:[%s2374_s25 + $0x10] sm:$0xf] (%p2169_p12)  ;;  %v1345_v47 = vld [vmem:[%s2374_s25 + $0x14] sm:$0xf] (%p2169_p12)  ;;  %v1347_v48 = vld [vmem:[%s2374_s25 + $0x18] sm:$0xf] (%p2169_p12) }
 0x1c1   : > { %1340 = vst [vmem:[%s1319_s5 + $0x10] sm:$0xf] (%p2169_p12), %v1339_v44  ;;  %1342 = vst [vmem:[%s1319_s5 + $0x18] sm:$0xf] (%p2169_p12), %v1341_v45  ;;  %v1349_v49 = vld [vmem:[%s2374_s25 + $0x1c] sm:$0xf] (%p2169_p12) }
 0x1c2   : > { %1344 = vst [vmem:[%s1319_s5 + $0x20] sm:$0xf] (%p2169_p12), %v1343_v46  ;;  %1346 = vst [vmem:[%s1319_s5 + $0x28] sm:$0xf] (%p2169_p12), %v1345_v47  ;;  %v1351_v50 = vld [vmem:[%s2374_s25 + $0x20] sm:$0xf] (%p2169_p12) }
 0x1c3   : > { %1348 = vst [vmem:[%s1319_s5 + $0x30] sm:$0xf] (%p2169_p12), %v1347_v48  ;;  %1350 = vst [vmem:[%s1319_s5 + $0x38] sm:$0xf] (%p2169_p12), %v1349_v49  ;;  %v1353_v51 = vld [vmem:[%s2374_s25 + $0x24] sm:$0xf] (%p2169_p12) }
 0x1c4   : > { %v1355_v52 = vld [vmem:[%s2374_s25 + $0x28] sm:$0xf] (%p2169_p12)  ;;  %1352 = vst [vmem:[%s1319_s5 + $0x40] sm:$0xf] (%p2169_p12), %v1351_v50  ;;  %1354 = vst [vmem:[%s1319_s5 + $0x48] sm:$0xf] (%p2169_p12), %v1353_v51 }
 0x1c5   : > { %v1335_v42 = vld [vmem:[%s2374_s25] sm:$0xf] (%p2169_p12)  ;;  %v1337_v43 = vld [vmem:[%s2374_s25 + $0x4] sm:$0xf] (%p2169_p12)  ;;  %1356 = vst [vmem:[%s1319_s5 + $0x50] sm:$0xf] (%p2169_p12), %v1355_v52 }
 0x1c6   : > { %1336 = vst [vmem:[%s1319_s5] sm:$0xf] %v1335_v42  ;;  %1338 = vst [vmem:[%s1319_s5 + $0x8] sm:$0xf] %v1337_v43  ;;  %v1357_v53 = vld [vmem:[%s2374_s25 + $0x2c] sm:$0xf] }
 0x1c7   : > { %v1359_v54 = vld [vmem:[%s2374_s25 + $0x30] sm:$0xf]  ;;  %v1361_v55 = vld [vmem:[%s2374_s25 + $0x34] sm:$0xf]  ;;  %1358 = vst [vmem:[%s1319_s5 + $0x58] sm:$0xf] %v1357_v53 }
 0x1c8   : > { %1360 = vst [vmem:[%s1319_s5 + $0x60] sm:$0xf] %v1359_v54  ;;  %1362 = vst [vmem:[%s1319_s5 + $0x68] sm:$0xf] %v1361_v55  ;;  %v1363_v56 = vld [vmem:[%s2374_s25 + $0x38] sm:$0xf] }
 0x1c9   : > { %v1365_v57 = vld [vmem:[%s2374_s25 + $0x3c] sm:$0xf]  ;;  %1364 = vst [vmem:[%s1319_s5 + $0x70] sm:$0xf] %v1363_v56 }
 0x1ca   : > { %1366 = vst [vmem:[%s1319_s5 + $0x78] sm:$0xf] %v1365_v57 }
 0x1cb PF: > { %s13_s22 = sadd.s32 1, %s2052_s22   ;;  %s2507_s10 = sld [smem:[#allocation6_spill]] }
 0x1cc   : > { %p10_p6 = scmp.ge.s32.totalorder %s13_s22, 6   ;;  %s2508_s12 = smov %s2016_s13 }
 0x1cd   : > { %s2509_s13 = smov %s2167_s9  ;;  %s2510_s14 = smov %s2024_s15 }
 0x1ce   : > { %s2511_s15 = smov %s2164_s8  ;;  %s2512_s16 = smov %s2032_s17 }
 0x1cf   : > { %s2513_s17 = smov %s2150_s30  ;;  %s2514_s18 = smov %s2044_s20 }
 0x1d0   : > { %s2515_s19 = smov %s2048_s21  ;;  %s2516_s20 = smov %s2519_s24 }
 0x1d1   : > { %s2517_s21 = smov %s2507_s10  ;;  %12 = sbr.rel (!%p10_p6) target bundleno = 9 (0x9), region = 200 }

</bundles_post_ra>
